<compile_context>
chip_gen: v7x
topology: tpu7x:2x2x1
jax: 0.10.0
libtpu: 0.0.40
codegen_flags: <defaults>
</compile_context>

<pallas_src>
import functools

import jax
import jax.numpy as jnp
from jax.experimental import pallas as pl
from jax.experimental.pallas import tpu as pltpu

# Scaled-down demo constants (original: 1600 / 200 / 160000).  The kernels
# themselves handle the production sizes via zero-padding + tiling.
N_DIM_HIDDEN_SYNTH = 256
N_DIM_VOICE_QUAL = 128
N_FRAMES = 1024


def _fc1_kernel(wave_ref, w1w_ref, vq_ref, w1v_ref, b1_ref, h_ref, acc_ref):
    """Layer 1: acc(B, th) = b1 + vq @ W1v + sum_k wave_k @ W1w_k ; h = relu(acc).

    Grid = (H tiles [parallel], K tiles [arbitrary/reduction]).
    """
    k = pl.program_id(1)

    # Initialize the per-H-tile accumulator with bias + the (small) vq part.
    @pl.when(k == 0)
    def _():
        acc_ref[...] = (
            jnp.dot(vq_ref[...], w1v_ref[...],
                    preferred_element_type=jnp.float32)
            + b1_ref[...].astype(jnp.float32)
        )

    # Stream this K-slab of the waveform part of layer 1 through the MXU.
    acc_ref[...] += jnp.dot(
        wave_ref[...], w1w_ref[...], preferred_element_type=jnp.float32
    )

    # Finalize: ReLU, emit bf16 hidden activations for layer 2.
    @pl.when(k == pl.num_programs(1) - 1)
    def _():
        h_ref[...] = jnp.maximum(acc_ref[...], 0.0).astype(h_ref.dtype)


def _fc2_kernel(h_ref, w2t_ref, b2_ref, o_ref):
    """Layer 2 per F tile: o = (sigmoid(h @ W2t_tile + b2_tile) - 0.5) * 2."""
    y = jnp.dot(h_ref[...], w2t_ref[...], preferred_element_type=jnp.float32)
    y = y + b2_ref[...].astype(jnp.float32)
    y = jax.nn.sigmoid(y)
    o_ref[...] = ((y - 0.5) * 2.0).astype(o_ref.dtype)


def _pad_to(x, mult, axis):
    """Zero-pad `axis` of x up to a multiple of `mult` (exact for this math)."""
    pad = (-x.shape[axis]) % mult
    if pad == 0:
        return x
    widths = [(0, 0)] * x.ndim
    widths[axis] = (0, pad)
    return jnp.pad(x, widths)


@functools.partial(jax.jit, static_argnames=("tk", "th", "tf"))
def voice_synthesizer(waveforms, vq, w1t_wave, w1t_vq, b1, w2t, b2,
                      *, tk=512, th=128, tf=512):
    """waveforms: [B, N_FRAMES] f32, vq: [B, N_DIM_VOICE_QUAL] f32 -> [B, N_FRAMES] f32.

    Weights are transposed ([in, out]) and streamed as bf16; tk/th/tf are the
    K / hidden / output-feature tile sizes (all multiples of 128).
    """
    B, Kw = waveforms.shape
    Kv = vq.shape[1]
    H = w1t_wave.shape[1]
    F = w2t.shape[1]

    # bf16 streaming operands (f32 accumulation happens inside the kernels).
    wave = _pad_to(waveforms.astype(jnp.bfloat16), tk, 1)
    vq_b = vq.astype(jnp.bfloat16)
    w1w = _pad_to(_pad_to(w1t_wave.astype(jnp.bfloat16), tk, 0), th, 1)
    w1v = _pad_to(w1t_vq.astype(jnp.bfloat16), th, 1)
    b1p = _pad_to(b1.astype(jnp.float32).reshape(1, H), th, 1)
    w2p = _pad_to(w2t.astype(jnp.bfloat16), tf, 1)
    b2p = _pad_to(b2.astype(jnp.float32).reshape(1, F), tf, 1)

    kw_p = wave.shape[1]
    h_p = w1w.shape[1]
    f_p = w2p.shape[1]

    cparams = dict(vmem_limit_bytes=32 * 1024 * 1024)

    # ---- Layer 1: K-reduction, tiled over H (parallel) x K (reduction). ----
    h_pad = pl.pallas_call(
        _fc1_kernel,
        out_shape=jax.ShapeDtypeStruct((B, h_p), jnp.bfloat16),
        grid_spec=pltpu.PrefetchScalarGridSpec(
            num_scalar_prefetch=0,
            grid=(h_p // th, kw_p // tk),
            in_specs=[
                pl.BlockSpec((B, tk), lambda j, k: (0, k)),    # waveform K-slab
                pl.BlockSpec((tk, th), lambda j, k: (k, j)),   # W1^T wave slab
                pl.BlockSpec((B, Kv), lambda j, k: (0, 0)),    # vq (small, resident)
                pl.BlockSpec((Kv, th), lambda j, k: (0, j)),   # W1^T vq slab
                pl.BlockSpec((1, th), lambda j, k: (0, j)),    # b1 tile
            ],
            out_specs=pl.BlockSpec((B, th), lambda j, k: (0, j)),
            scratch_shapes=[pltpu.VMEM((B, th), jnp.float32)],
        ),
        compiler_params=pltpu.CompilerParams(
            dimension_semantics=("parallel", "arbitrary"), **cparams
        ),
    )(wave, w1w, vq_b, w1v, b1p)

    h = h_pad[:, :H]

    # ---- Layer 2: tiled over F (parallel), lane-dense output tiles. ----
    out_pad = pl.pallas_call(
        _fc2_kernel,
        out_shape=jax.ShapeDtypeStruct((B, f_p), jnp.float32),
        grid_spec=pltpu.PrefetchScalarGridSpec(
            num_scalar_prefetch=0,
            grid=(f_p // tf,),
            in_specs=[
                pl.BlockSpec((B, H), lambda i: (0, 0)),        # hidden (resident)
                pl.BlockSpec((H, tf), lambda i: (0, i)),       # W2^T F tile
                pl.BlockSpec((1, tf), lambda i: (0, i)),       # b2 tile
            ],
            out_specs=pl.BlockSpec((B, tf), lambda i: (0, i)),
        ),
        compiler_params=pltpu.CompilerParams(
            dimension_semantics=("parallel",), **cparams
        ),
    )(h, w2p, b2p)

    return out_pad[:, :F]


def init_params(key):
    """PyTorch-style uniform(+-1/sqrt(fan_in)) init; weights stored as bf16 W^T."""
    k1, k2, k3, k4, k5 = jax.random.split(key, 5)
    d_in = N_DIM_VOICE_QUAL + N_FRAMES
    lim1 = 1.0 / (d_in ** 0.5)
    lim2 = 1.0 / (N_DIM_HIDDEN_SYNTH ** 0.5)
    w1t_wave = jax.random.uniform(
        k1, (N_FRAMES, N_DIM_HIDDEN_SYNTH), jnp.float32, -lim1, lim1
    ).astype(jnp.bfloat16)
    w1t_vq = jax.random.uniform(
        k2, (N_DIM_VOICE_QUAL, N_DIM_HIDDEN_SYNTH), jnp.float32, -lim1, lim1
    ).astype(jnp.bfloat16)
    b1 = jax.random.uniform(k3, (N_DIM_HIDDEN_SYNTH,), jnp.float32, -lim1, lim1)
    w2t = jax.random.uniform(
        k4, (N_DIM_HIDDEN_SYNTH, N_FRAMES), jnp.float32, -lim2, lim2
    ).astype(jnp.bfloat16)
    b2 = jax.random.uniform(k5, (N_FRAMES,), jnp.float32, -lim2, lim2)
    return w1t_wave, w1t_vq, b1, w2t, b2


if __name__ == "__main__":
    key = jax.random.PRNGKey(0)
    k_wave, k_vq, k_params = jax.random.split(key, 3)

    # NOTE: at B=8 this workload is hopelessly HBM-bound (~4 FLOP/byte); the
    # biggest remaining lever is caller-level batching (pack B up to 128-256
    # rows per call) to amortize the weight stream.
    B = 8
    waveforms = jax.random.normal(k_wave, (B, N_FRAMES), jnp.float32)
    vq = jax.random.normal(k_vq, (B, N_DIM_VOICE_QUAL), jnp.float32)
    w1t_wave, w1t_vq, b1, w2t, b2 = init_params(k_params)

    out = voice_synthesizer(waveforms, vq, w1t_wave, w1t_vq, b1, w2t, b2)
    out = jax.block_until_ready(out)
    assert out.shape == (B, N_FRAMES)

    # Reference 1: same math/dtypes as the kernels (bf16 operands, f32 accum).
    x_bf = jnp.concatenate([waveforms, vq], axis=1).astype(jnp.bfloat16)
    w1t_full = jnp.concatenate([w1t_wave, w1t_vq], axis=0)
    h_ref = jnp.dot(x_bf, w1t_full, preferred_element_type=jnp.float32) + b1
    h_ref = jnp.maximum(h_ref, 0.0).astype(jnp.bfloat16)
    y_ref = jnp.dot(h_ref, w2t, preferred_element_type=jnp.float32) + b2
    ref_bf16 = (jax.nn.sigmoid(y_ref) - 0.5) * 2.0
    assert jnp.allclose(out, ref_bf16, atol=5e-3, rtol=0.0), float(
        jnp.max(jnp.abs(out - ref_bf16))
    )

    # Reference 2: original module semantics in f32 (looser tol: bf16 stream).
    x32 = jnp.concatenate([waveforms, vq], axis=1)
    h32 = jnp.maximum(x32 @ w1t_full.astype(jnp.float32) + b1, 0.0)
    ref_f32 = (jax.nn.sigmoid(h32 @ w2t.astype(jnp.float32) + b2) - 0.5) * 2.0
    assert jnp.allclose(out, ref_f32, atol=3e-2, rtol=0.0), float(
        jnp.max(jnp.abs(out - ref_f32))
    )

    print("KERNEL_OK")
</pallas_src>

<mosaic_0001>
module attributes {stable_mosaic.version = 11 : i64} {
  func.func @_fc2_kernel(%arg0: i32, %arg1: memref<8x256xbf16, #tpu.memory_space<vmem>>, %arg2: memref<256x512xbf16, #tpu.memory_space<vmem>>, %arg3: memref<1x512xf32, #tpu.memory_space<vmem>>, %arg4: memref<8x512xf32, #tpu.memory_space<vmem>>) attributes {dimension_semantics = [#tpu.dimension_semantics<parallel>], iteration_bounds = array<i64: 2>, scalar_prefetch = 0 : i64, scratch_operands = 0 : i64, tpu.core_type = #tpu.core_type<tc>, window_params = [{pipeline_mode = #tpu.pipeline_mode<synchronous>, transform_indices = @transform_0, window_bounds = array<i64: 8, 256>}, {transform_indices = @transform_1, window_bounds = array<i64: 256, 512>}, {transform_indices = @transform_2, window_bounds = array<i64: 1, 512>}, {transform_indices = @transform_3, window_bounds = array<i64: 8, 512>}]} {
    %c0 = arith.constant 0 : index
    %c0_0 = arith.constant 0 : index
    %0 = vector.load %arg1[%c0, %c0_0] : memref<8x256xbf16, #tpu.memory_space<vmem>>, vector<8x256xbf16>
    %c0_1 = arith.constant 0 : index
    %c0_2 = arith.constant 0 : index
    %1 = vector.load %arg2[%c0_1, %c0_2] : memref<256x512xbf16, #tpu.memory_space<vmem>>, vector<256x512xbf16>
    %cst = arith.constant dense<0.000000e+00> : vector<8x512xf32>
    %2 = tpu.matmul %0, %1, %cst {dimension_numbers = #tpu.dot_dimension_numbers<[1], [0], [0], [1], [0, 0, 1, 1], [], []>} : vector<8x256xbf16>, vector<256x512xbf16>, vector<8x512xf32> -> vector<8x512xf32>
    %c0_3 = arith.constant 0 : index
    %c0_4 = arith.constant 0 : index
    %3 = vector.load %arg3[%c0_3, %c0_4] : memref<1x512xf32, #tpu.memory_space<vmem>>, vector<1x512xf32>
    %4 = vector.broadcast %3 : vector<1x512xf32> to vector<8x512xf32>
    %5 = arith.addf %2, %4 : vector<8x512xf32>
    %6 = arith.negf %5 : vector<8x512xf32>
    %7 = math.exp %6 : vector<8x512xf32>
    %cst_5 = arith.constant 1.000000e+00 : f32
    %8 = vector.broadcast %cst_5 : f32 to vector<8x512xf32>
    %9 = arith.addf %8, %7 : vector<8x512xf32>
    %10 = arith.divf %8, %9 : vector<8x512xf32>
    %cst_6 = arith.constant 5.000000e-01 : f32
    %11 = vector.broadcast %cst_6 : f32 to vector<8x512xf32>
    %12 = arith.subf %10, %11 : vector<8x512xf32>
    %cst_7 = arith.constant 2.000000e+00 : f32
    %13 = vector.broadcast %cst_7 : f32 to vector<8x512xf32>
    %14 = arith.mulf %12, %13 : vector<8x512xf32>
    %c0_8 = arith.constant 0 : index
    %c0_9 = arith.constant 0 : index
    %15 = vector.load %arg4[%c0_8, %c0_9] : memref<8x512xf32, #tpu.memory_space<vmem>>, vector<8x512xf32>
    tpu.vector_store %arg4[%c0_8, %c0_9], %14 {strides = array<i32>} : memref<8x512xf32, #tpu.memory_space<vmem>>, vector<8x512xf32>,
    return
  }
  func.func @transform_0(%arg0: i32) -> (i32, i32) {
    %c0_i32 = arith.constant 0 : i32
    %c0_i32_0 = arith.constant 0 : i32
    %c0_i32_1 = arith.constant 0 : i32
    return %c0_i32, %c0_i32_0 : i32, i32
  }
  func.func @transform_1(%arg0: i32) -> (i32, i32) {
    %c0_i32 = arith.constant 0 : i32
    %c0_i32_0 = arith.constant 0 : i32
    return %c0_i32, %arg0 : i32, i32
  }
  func.func @transform_2(%arg0: i32) -> (i32, i32) {
    %c0_i32 = arith.constant 0 : i32
    %c0_i32_0 = arith.constant 0 : i32
    return %c0_i32, %arg0 : i32, i32
  }
  func.func @transform_3(%arg0: i32) -> (i32, i32) {
    %c0_i32 = arith.constant 0 : i32
    %c0_i32_0 = arith.constant 0 : i32
    return %c0_i32, %arg0 : i32, i32
  }
}

module attributes {stable_mosaic.version = 11 : i64} {
  func.func @_fc1_kernel(%arg0: i32, %arg1: i32, %arg2: memref<8x512xbf16, #tpu.memory_space<vmem>>, %arg3: memref<512x128xbf16, #tpu.memory_space<vmem>>, %arg4: memref<8x128xbf16, #tpu.memory_space<vmem>>, %arg5: memref<128x128xbf16, #tpu.memory_space<vmem>>, %arg6: memref<1x128xf32, #tpu.memory_space<vmem>>, %arg7: memref<8x128xbf16, #tpu.memory_space<vmem>>, %arg8: memref<8x128xf32, #tpu.memory_space<vmem>>) attributes {dimension_semantics = [#tpu.dimension_semantics<parallel>, #tpu.dimension_semantics<arbitrary>], iteration_bounds = array<i64: 2, 2>, scalar_prefetch = 0 : i64, scratch_operands = 1 : i64, tpu.core_type = #tpu.core_type<tc>, window_params = [{transform_indices = @transform_0, window_bounds = array<i64: 8, 512>}, {transform_indices = @transform_1, window_bounds = array<i64: 512, 128>}, {pipeline_mode = #tpu.pipeline_mode<synchronous>, transform_indices = @transform_2, window_bounds = array<i64: 8, 128>}, {transform_indices = @transform_3, window_bounds = array<i64: 128, 128>}, {transform_indices = @transform_4, window_bounds = array<i64: 1, 128>}, {transform_indices = @transform_5, window_bounds = array<i64: 8, 128>}]} {
    %c0_i32 = arith.constant 0 : i32
    %0 = arith.cmpi eq, %arg1, %c0_i32 : i32
    %1 = arith.extui %0 : i1 to i32
    %c0_i32_0 = arith.constant 0 : i32
    %2 = arith.cmpi ne, %1, %c0_i32_0 : i32
    scf.if %2 {
      %c0_9 = arith.constant 0 : index
      %c0_10 = arith.constant 0 : index
      %12 = vector.load %arg4[%c0_9, %c0_10] : memref<8x128xbf16, #tpu.memory_space<vmem>>, vector<8x128xbf16>
      %c0_11 = arith.constant 0 : index
      %c0_12 = arith.constant 0 : index
      %13 = vector.load %arg5[%c0_11, %c0_12] : memref<128x128xbf16, #tpu.memory_space<vmem>>, vector<128x128xbf16>
      %cst_13 = arith.constant dense<0.000000e+00> : vector<8x128xf32>
      %14 = tpu.matmul %12, %13, %cst_13 {dimension_numbers = #tpu.dot_dimension_numbers<[1], [0], [0], [1], [0, 0, 1, 1], [], []>} : vector<8x128xbf16>, vector<128x128xbf16>, vector<8x128xf32> -> vector<8x128xf32>
      %c0_14 = arith.constant 0 : index
      %c0_15 = arith.constant 0 : index
      %15 = vector.load %arg6[%c0_14, %c0_15] : memref<1x128xf32, #tpu.memory_space<vmem>>, vector<1x128xf32>
      %16 = vector.broadcast %15 : vector<1x128xf32> to vector<8x128xf32>
      %17 = arith.addf %14, %16 : vector<8x128xf32>
      %c0_16 = arith.constant 0 : index
      %c0_17 = arith.constant 0 : index
      %18 = vector.load %arg8[%c0_16, %c0_17] : memref<8x128xf32, #tpu.memory_space<vmem>>, vector<8x128xf32>
      tpu.vector_store %arg8[%c0_16, %c0_17], %17 {strides = array<i32>} : memref<8x128xf32, #tpu.memory_space<vmem>>, vector<8x128xf32>,
    } else {
    }
    %c0 = arith.constant 0 : index
    %c0_1 = arith.constant 0 : index
    %3 = vector.load %arg8[%c0, %c0_1] : memref<8x128xf32, #tpu.memory_space<vmem>>, vector<8x128xf32>
    %c0_2 = arith.constant 0 : index
    %c0_3 = arith.constant 0 : index
    %4 = vector.load %arg2[%c0_2, %c0_3] : memref<8x512xbf16, #tpu.memory_space<vmem>>, vector<8x512xbf16>
    %c0_4 = arith.constant 0 : index
    %c0_5 = arith.constant 0 : index
    %5 = vector.load %arg3[%c0_4, %c0_5] : memref<512x128xbf16, #tpu.memory_space<vmem>>, vector<512x128xbf16>
    %cst = arith.constant dense<0.000000e+00> : vector<8x128xf32>
    %6 = tpu.matmul %4, %5, %cst {dimension_numbers = #tpu.dot_dimension_numbers<[1], [0], [0], [1], [0, 0, 1, 1], [], []>} : vector<8x512xbf16>, vector<512x128xbf16>, vector<8x128xf32> -> vector<8x128xf32>
    %7 = arith.addf %3, %6 : vector<8x128xf32>
    %c0_6 = arith.constant 0 : index
    %c0_7 = arith.constant 0 : index
    %8 = vector.load %arg8[%c0_6, %c0_7] : memref<8x128xf32, #tpu.memory_space<vmem>>, vector<8x128xf32>
    tpu.vector_store %arg8[%c0_6, %c0_7], %7 {strides = array<i32>} : memref<8x128xf32, #tpu.memory_space<vmem>>, vector<8x128xf32>,
    %c1_i32 = arith.constant 1 : i32
    %9 = arith.cmpi eq, %arg1, %c1_i32 : i32
    %10 = arith.extui %9 : i1 to i32
    %c0_i32_8 = arith.constant 0 : i32
    %11 = arith.cmpi ne, %10, %c0_i32_8 : i32
    scf.if %11 {
      %c0_9 = arith.constant 0 : index
      %c0_10 = arith.constant 0 : index
      %12 = vector.load %arg8[%c0_9, %c0_10] : memref<8x128xf32, #tpu.memory_space<vmem>>, vector<8x128xf32>
      %cst_11 = arith.constant 0.000000e+00 : f32
      %13 = vector.broadcast %cst_11 : f32 to vector<8x128xf32>
      %14 = arith.maximumf %12, %13 : vector<8x128xf32>
      %15 = arith.truncf %14 : vector<8x128xf32> to vector<8x128xbf16>
      %c0_12 = arith.constant 0 : index
      %c0_13 = arith.constant 0 : index
      %16 = vector.load %arg7[%c0_12, %c0_13] : memref<8x128xbf16, #tpu.memory_space<vmem>>, vector<8x128xbf16>
      tpu.vector_store %arg7[%c0_12, %c0_13], %15 {strides = array<i32>} : memref<8x128xbf16, #tpu.memory_space<vmem>>, vector<8x128xbf16>,
    } else {
    }
    return
  }
  func.func @transform_0(%arg0: i32, %arg1: i32) -> (i32, i32) {
    %c0_i32 = arith.constant 0 : i32
    %c0_i32_0 = arith.constant 0 : i32
    return %c0_i32, %arg1 : i32, i32
  }
  func.func @transform_1(%arg0: i32, %arg1: i32) -> (i32, i32) {
    %c0_i32 = arith.constant 0 : i32
    return %arg1, %arg0 : i32, i32
  }
  func.func @transform_2(%arg0: i32, %arg1: i32) -> (i32, i32) {
    %c0_i32 = arith.constant 0 : i32
    %c0_i32_0 = arith.constant 0 : i32
    %c0_i32_1 = arith.constant 0 : i32
    return %c0_i32, %c0_i32_0 : i32, i32
  }
  func.func @transform_3(%arg0: i32, %arg1: i32) -> (i32, i32) {
    %c0_i32 = arith.constant 0 : i32
    %c0_i32_0 = arith.constant 0 : i32
    return %c0_i32, %arg0 : i32, i32
  }
  func.func @transform_4(%arg0: i32, %arg1: i32) -> (i32, i32) {
    %c0_i32 = arith.constant 0 : i32
    %c0_i32_0 = arith.constant 0 : i32
    return %c0_i32, %arg0 : i32, i32
  }
  func.func @transform_5(%arg0: i32, %arg1: i32) -> (i32, i32) {
    %c0_i32 = arith.constant 0 : i32
    %c0_i32_0 = arith.constant 0 : i32
    return %c0_i32, %arg0 : i32, i32
  }
}

</mosaic_0001>

<bundles_post_ra>
// kernel: voice_synthesizer.3
= control target key start
LH: loop header
LB: loop body
LE: loop exit
PB: predicated region body
PF: predicated region fallthrough
CT: control target
= control target key end

     0   :  { %8 = vsyncpa [#allocation4], 0  ;;  %s1607_s0 = inlined_call_operand.vmem [shape: bf16[8,256], index: 0, kind: input, shape index: {}]   ;;  %s1608_s1 = inlined_call_operand.vmem [shape: bf16[256,1024], index: 1, kind: input, shape index: {}]   ;;  %s1609_s2 = inlined_call_operand.vmem [shape: f32[1,1024], index: 2, kind: input, shape index: {}]   ;;  %s1610_s3 = inlined_call_operand.hbm [shape: f32[8,1024], index: 3, kind: output, shape index: {}]  }
   0x1   :  { %10 = vsyncpa [#allocation4 + $0x1], 0  ;;  %s1286_s12 = smov 0   ;;  %s1288_s13 = smov 0  }
   0x2   :  { %s1290_s14 = smov 0   ;;  %s1292_s15 = smov 0  }
   0x3 LB: > { %s1307_s16 = sadd.s32 4294967295, %s1263_s15   ;;  %s957_s17 = sadd.s32 4294967294, %s1263_s15   ;;  %s1263_s15 = sphi %s1292_s15, %s1616_s15   ;;  %s1259_s14 = sphi %s1290_s14, %s1615_s14   ;;  %s1255_s13 = sphi %s1288_s13, %s1614_s13   ;;  %s1251_s12 = sphi %s1286_s12, %s1613_s12  }
   0x4   : > { %s1311_s18 = sadd.s32 1, %s1263_s15   ;;  %s44_s19 = sadd.s32 1, %s1259_s14 }
   0x5   : > { %s41_s20 = ssub.s32 %s1263_s15, %s1311_s18  ;;  %p51_p0 = scmp.ne.s32.totalorder %s1259_s14, %s1255_s13 }
   0x6   : > { %p42_p1 = scmp.eq.s32.totalorder %s41_s20, 0  ;;  %p52_p2 = scmp.eq.s32.totalorder %s1263_s15, 0 }
   0x7   : > { %p107_p3 = scmp.eq.s32.totalorder %s1307_s16, 1  ;;  %p112_p4 = scmp.ne.s32.totalorder %s1255_s13, %s1251_s12 }
   0x8   : > { %s1323_s21 = scalar_select %p42_p1, %s1259_s14, %s44_s19  }
   0x9   : > { %p53_p5 = por %p52_p2, %p51_p0  ;;  %p1325_p6 = por %p107_p3, %p51_p0 }
   0xa   : > { %p113_p7 = scmp.eq.s32.totalorder %s957_s17, 1  ;;  %p959_p9 = scmp.ge.s32.totalorder %s1263_s15, 2 }
   0xc   : > { %p1329_p8 = por %p113_p7, %p112_p4  ;;  %132 = sbr.rel (%p959_p9) target bundleno = 55 (0x37), region = 20 }
  0x13   : > { %135 = sbr.rel (!%p53_p5) target bundleno = 55 (0x37), region = 24  ;;  %s137_s24 = sand.u32 (%p53_p5), 1, %s1259_s14  }
  0x14   : > { %s1046_s25 = sshll.u32 (%p53_p5), %s1263_s15, 4  ;;  %s960_s26 = sshll.u32 (%p53_p5), %s137_s24, 9 }
  0x15   : > { %s1341_s29 = scalar_lea.vmem (%p53_p5), %s1608_s1, %s1046_s25  ;;  %s1346_s30 = scalar_lea.vmem (%p53_p5), [#allocation2], %s960_s26 }
  0x16   : > { %v155_v0 = vld [vmem:[%s1341_s29] sm:$0xff] (%p53_p5)  ;;  %v157_v1 = vld [vmem:[%s1341_s29 + $0x8] sm:$0xff] (%p53_p5) }
  0x17   : > { %v159_v2 = vld [vmem:[%s1341_s29 + $0x20] sm:$0xff] (%p53_p5)  ;;  %156 = vst [vmem:[%s1346_s30] sm:$0xff] (%p53_p5), %v155_v0  ;;  %158 = vst [vmem:[%s1346_s30 + $0x8] sm:$0xff] (%p53_p5), %v157_v1  ;;  %v161_v3 = vld [vmem:[%s1341_s29 + $0x28] sm:$0xff] (%p53_p5) }
  0x18   : > { %160 = vst [vmem:[%s1346_s30 + $0x10] sm:$0xff] (%p53_p5), %v159_v2  ;;  %v163_v4 = vld [vmem:[%s1341_s29 + $0x40] sm:$0xff] (%p53_p5)  ;;  %v165_v5 = vld [vmem:[%s1341_s29 + $0x48] sm:$0xff] (%p53_p5)  ;;  %162 = vst [vmem:[%s1346_s30 + $0x18] sm:$0xff] (%p53_p5), %v161_v3 }
  0x19   : > { %164 = vst [vmem:[%s1346_s30 + $0x20] sm:$0xff] (%p53_p5), %v163_v4  ;;  %166 = vst [vmem:[%s1346_s30 + $0x28] sm:$0xff] (%p53_p5), %v165_v5  ;;  %v167_v6 = vld [vmem:[%s1341_s29 + $0x60] sm:$0xff] (%p53_p5)  ;;  %v169_v7 = vld [vmem:[%s1341_s29 + $0x68] sm:$0xff] (%p53_p5) }
  0x1a   : > { %v171_v8 = vld [vmem:[%s1341_s29 + $0x80] sm:$0xff]  ;;  %168 = vst [vmem:[%s1346_s30 + $0x30] sm:$0xff] %v167_v6  ;;  %170 = vst [vmem:[%s1346_s30 + $0x38] sm:$0xff] %v169_v7  ;;  %v173_v9 = vld [vmem:[%s1341_s29 + $0x88] sm:$0xff] }
  0x1b   : > { %172 = vst [vmem:[%s1346_s30 + $0x40] sm:$0xff] %v171_v8  ;;  %v175_v10 = vld [vmem:[%s1341_s29 + $0xa0] sm:$0xff]  ;;  %v177_v11 = vld [vmem:[%s1341_s29 + $0xa8] sm:$0xff]  ;;  %174 = vst [vmem:[%s1346_s30 + $0x48] sm:$0xff] %v173_v9 }
  0x1c   : > { %176 = vst [vmem:[%s1346_s30 + $0x50] sm:$0xff] %v175_v10  ;;  %178 = vst [vmem:[%s1346_s30 + $0x58] sm:$0xff] %v177_v11  ;;  %v179_v12 = vld [vmem:[%s1341_s29 + $0xc0] sm:$0xff]  ;;  %v181_v13 = vld [vmem:[%s1341_s29 + $0xc8] sm:$0xff] }
  0x1d   : > { %v183_v14 = vld [vmem:[%s1341_s29 + $0xe0] sm:$0xff]  ;;  %180 = vst [vmem:[%s1346_s30 + $0x60] sm:$0xff] %v179_v12  ;;  %182 = vst [vmem:[%s1346_s30 + $0x68] sm:$0xff] %v181_v13  ;;  %v185_v15 = vld [vmem:[%s1341_s29 + $0xe8] sm:$0xff] }
  0x1e   : > { %184 = vst [vmem:[%s1346_s30 + $0x70] sm:$0xff] %v183_v14  ;;  %v187_v16 = vld [vmem:[%s1341_s29 + $0x100] sm:$0xff]  ;;  %v189_v17 = vld [vmem:[%s1341_s29 + $0x108] sm:$0xff]  ;;  %186 = vst [vmem:[%s1346_s30 + $0x78] sm:$0xff] %v185_v15 }
  0x1f   : > { %188 = vst [vmem:[%s1346_s30 + $0x80] sm:$0xff] %v187_v16  ;;  %190 = vst [vmem:[%s1346_s30 + $0x88] sm:$0xff] %v189_v17  ;;  %v191_v18 = vld [vmem:[%s1341_s29 + $0x120] sm:$0xff]  ;;  %v193_v19 = vld [vmem:[%s1341_s29 + $0x128] sm:$0xff] }
  0x20   : > { %v195_v20 = vld [vmem:[%s1341_s29 + $0x140] sm:$0xff]  ;;  %192 = vst [vmem:[%s1346_s30 + $0x90] sm:$0xff] %v191_v18  ;;  %194 = vst [vmem:[%s1346_s30 + $0x98] sm:$0xff] %v193_v19  ;;  %v197_v21 = vld [vmem:[%s1341_s29 + $0x148] sm:$0xff] }
  0x21   : > { %196 = vst [vmem:[%s1346_s30 + $0xa0] sm:$0xff] %v195_v20  ;;  %v199_v22 = vld [vmem:[%s1341_s29 + $0x160] sm:$0xff]  ;;  %v201_v23 = vld [vmem:[%s1341_s29 + $0x168] sm:$0xff]  ;;  %198 = vst [vmem:[%s1346_s30 + $0xa8] sm:$0xff] %v197_v21 }
  0x22   : > { %200 = vst [vmem:[%s1346_s30 + $0xb0] sm:$0xff] %v199_v22  ;;  %202 = vst [vmem:[%s1346_s30 + $0xb8] sm:$0xff] %v201_v23  ;;  %v203_v24 = vld [vmem:[%s1341_s29 + $0x180] sm:$0xff]  ;;  %v205_v25 = vld [vmem:[%s1341_s29 + $0x188] sm:$0xff] }
  0x23   : > { %v207_v26 = vld [vmem:[%s1341_s29 + $0x1a0] sm:$0xff]  ;;  %204 = vst [vmem:[%s1346_s30 + $0xc0] sm:$0xff] %v203_v24  ;;  %206 = vst [vmem:[%s1346_s30 + $0xc8] sm:$0xff] %v205_v25  ;;  %v209_v27 = vld [vmem:[%s1341_s29 + $0x1a8] sm:$0xff] }
  0x24   : > { %208 = vst [vmem:[%s1346_s30 + $0xd0] sm:$0xff] %v207_v26  ;;  %v211_v28 = vld [vmem:[%s1341_s29 + $0x1c0] sm:$0xff]  ;;  %v213_v29 = vld [vmem:[%s1341_s29 + $0x1c8] sm:$0xff]  ;;  %210 = vst [vmem:[%s1346_s30 + $0xd8] sm:$0xff] %v209_v27 }
  0x25   : > { %212 = vst [vmem:[%s1346_s30 + $0xe0] sm:$0xff] %v211_v28  ;;  %214 = vst [vmem:[%s1346_s30 + $0xe8] sm:$0xff] %v213_v29  ;;  %v215_v30 = vld [vmem:[%s1341_s29 + $0x1e0] sm:$0xff]  ;;  %v217_v31 = vld [vmem:[%s1341_s29 + $0x1e8] sm:$0xff] }
  0x26   : > { %v219_v32 = vld [vmem:[%s1341_s29 + $0x200] sm:$0xff]  ;;  %216 = vst [vmem:[%s1346_s30 + $0xf0] sm:$0xff] %v215_v30  ;;  %218 = vst [vmem:[%s1346_s30 + $0xf8] sm:$0xff] %v217_v31  ;;  %v221_v33 = vld [vmem:[%s1341_s29 + $0x208] sm:$0xff] }
  0x27   : > { %220 = vst [vmem:[%s1346_s30 + $0x100] sm:$0xff] %v219_v32  ;;  %v223_v34 = vld [vmem:[%s1341_s29 + $0x220] sm:$0xff]  ;;  %v225_v35 = vld [vmem:[%s1341_s29 + $0x228] sm:$0xff]  ;;  %222 = vst [vmem:[%s1346_s30 + $0x108] sm:$0xff] %v221_v33 }
  0x28   : > { %224 = vst [vmem:[%s1346_s30 + $0x110] sm:$0xff] %v223_v34  ;;  %226 = vst [vmem:[%s1346_s30 + $0x118] sm:$0xff] %v225_v35  ;;  %v227_v36 = vld [vmem:[%s1341_s29 + $0x240] sm:$0xff]  ;;  %v229_v37 = vld [vmem:[%s1341_s29 + $0x248] sm:$0xff] }
  0x29   : > { %v231_v38 = vld [vmem:[%s1341_s29 + $0x260] sm:$0xff]  ;;  %228 = vst [vmem:[%s1346_s30 + $0x120] sm:$0xff] %v227_v36  ;;  %230 = vst [vmem:[%s1346_s30 + $0x128] sm:$0xff] %v229_v37  ;;  %v233_v39 = vld [vmem:[%s1341_s29 + $0x268] sm:$0xff] }
  0x2a   : > { %232 = vst [vmem:[%s1346_s30 + $0x130] sm:$0xff] %v231_v38  ;;  %v235_v40 = vld [vmem:[%s1341_s29 + $0x280] sm:$0xff]  ;;  %v237_v41 = vld [vmem:[%s1341_s29 + $0x288] sm:$0xff]  ;;  %234 = vst [vmem:[%s1346_s30 + $0x138] sm:$0xff] %v233_v39 }
  0x2b   : > { %236 = vst [vmem:[%s1346_s30 + $0x140] sm:$0xff] %v235_v40  ;;  %238 = vst [vmem:[%s1346_s30 + $0x148] sm:$0xff] %v237_v41  ;;  %v239_v42 = vld [vmem:[%s1341_s29 + $0x2a0] sm:$0xff]  ;;  %v241_v43 = vld [vmem:[%s1341_s29 + $0x2a8] sm:$0xff] }
  0x2c   : > { %v243_v44 = vld [vmem:[%s1341_s29 + $0x2c0] sm:$0xff]  ;;  %240 = vst [vmem:[%s1346_s30 + $0x150] sm:$0xff] %v239_v42  ;;  %242 = vst [vmem:[%s1346_s30 + $0x158] sm:$0xff] %v241_v43  ;;  %v245_v45 = vld [vmem:[%s1341_s29 + $0x2c8] sm:$0xff] }
  0x2d   : > { %244 = vst [vmem:[%s1346_s30 + $0x160] sm:$0xff] %v243_v44  ;;  %v247_v46 = vld [vmem:[%s1341_s29 + $0x2e0] sm:$0xff]  ;;  %v249_v47 = vld [vmem:[%s1341_s29 + $0x2e8] sm:$0xff]  ;;  %246 = vst [vmem:[%s1346_s30 + $0x168] sm:$0xff] %v245_v45 }
  0x2e   : > { %248 = vst [vmem:[%s1346_s30 + $0x170] sm:$0xff] %v247_v46  ;;  %250 = vst [vmem:[%s1346_s30 + $0x178] sm:$0xff] %v249_v47  ;;  %v251_v48 = vld [vmem:[%s1341_s29 + $0x300] sm:$0xff]  ;;  %v253_v49 = vld [vmem:[%s1341_s29 + $0x308] sm:$0xff] }
  0x2f   : > { %v255_v50 = vld [vmem:[%s1341_s29 + $0x320] sm:$0xff]  ;;  %252 = vst [vmem:[%s1346_s30 + $0x180] sm:$0xff] %v251_v48  ;;  %254 = vst [vmem:[%s1346_s30 + $0x188] sm:$0xff] %v253_v49  ;;  %v257_v51 = vld [vmem:[%s1341_s29 + $0x328] sm:$0xff] }
  0x30   : > { %256 = vst [vmem:[%s1346_s30 + $0x190] sm:$0xff] %v255_v50  ;;  %v259_v52 = vld [vmem:[%s1341_s29 + $0x340] sm:$0xff]  ;;  %v261_v53 = vld [vmem:[%s1341_s29 + $0x348] sm:$0xff]  ;;  %258 = vst [vmem:[%s1346_s30 + $0x198] sm:$0xff] %v257_v51 }
  0x31   : > { %260 = vst [vmem:[%s1346_s30 + $0x1a0] sm:$0xff] %v259_v52  ;;  %262 = vst [vmem:[%s1346_s30 + $0x1a8] sm:$0xff] %v261_v53  ;;  %v263_v54 = vld [vmem:[%s1341_s29 + $0x360] sm:$0xff]  ;;  %v265_v55 = vld [vmem:[%s1341_s29 + $0x368] sm:$0xff] }
  0x32   : > { %v267_v56 = vld [vmem:[%s1341_s29 + $0x380] sm:$0xff]  ;;  %264 = vst [vmem:[%s1346_s30 + $0x1b0] sm:$0xff] %v263_v54  ;;  %266 = vst [vmem:[%s1346_s30 + $0x1b8] sm:$0xff] %v265_v55  ;;  %v269_v57 = vld [vmem:[%s1341_s29 + $0x388] sm:$0xff] }
  0x33   : > { %268 = vst [vmem:[%s1346_s30 + $0x1c0] sm:$0xff] %v267_v56  ;;  %v271_v58 = vld [vmem:[%s1341_s29 + $0x3a0] sm:$0xff]  ;;  %v273_v59 = vld [vmem:[%s1341_s29 + $0x3a8] sm:$0xff]  ;;  %270 = vst [vmem:[%s1346_s30 + $0x1c8] sm:$0xff] %v269_v57 }
  0x34   : > { %272 = vst [vmem:[%s1346_s30 + $0x1d0] sm:$0xff] %v271_v58  ;;  %274 = vst [vmem:[%s1346_s30 + $0x1d8] sm:$0xff] %v273_v59  ;;  %v275_v60 = vld [vmem:[%s1341_s29 + $0x3c0] sm:$0xff]  ;;  %v277_v61 = vld [vmem:[%s1341_s29 + $0x3c8] sm:$0xff] }
  0x35   : > { %v279_v62 = vld [vmem:[%s1341_s29 + $0x3e0] sm:$0xff]  ;;  %276 = vst [vmem:[%s1346_s30 + $0x1e0] sm:$0xff] %v275_v60  ;;  %278 = vst [vmem:[%s1346_s30 + $0x1e8] sm:$0xff] %v277_v61  ;;  %v281_v63 = vld [vmem:[%s1341_s29 + $0x3e8] sm:$0xff] }
  0x36   : > { %280 = vst [vmem:[%s1346_s30 + $0x1f0] sm:$0xff] %v279_v62  ;;  %282 = vst [vmem:[%s1346_s30 + $0x1f8] sm:$0xff] %v281_v63 }
  0x37 PF: > { %p963_p10 = scmp.ge.s32.totalorder %s1263_s15, 1  ;;  %p295_p11 = scmp.lt.s32.totalorder %s1263_s15, 3 }
  0x39   : > { %p296_p12 = pnand %p963_p10, %p295_p11 }
  0x3a   : > { %s1476_s4 = sand.u32 (!%p296_p12), 1, %s1255_s13   ;;  %v1481_v0 = vld [vmem:[%s1607_s0] sm:$0xff] (!%p296_p12)  ;;  %s966_s9 = sshll.u32 (!%p296_p12), %s1307_s16, 2 }
  0x3b   : > { %299 = sbr.rel (%p296_p12) target bundleno = 387 (0x183), region = 51  ;;  %s964_s7 = sshll.u32 (!%p296_p12), %s1476_s4, 9  ;;  %v968_v1 = vcombine.high (!%p296_p12), %v1481_v0, %v1481_v0 }
  0x3c   : > { %s1486_s8 = scalar_lea.vmem (!%p296_p12), [#allocation2], %s964_s7  ;;  %p331_p13 = scmp.lt.s32.totalorder (!%p296_p12), %s966_s9, 7 }
  0x3d   : > { %v1087_v2 = vld [vmem:[%s1486_s8 + $0x4] ss:$16 sps:$4 sm:$0xff] (!%p296_p12)   ;;  %782 = vmatprep.mubr.bf16.mxu0 (!%p296_p12), %v968_v1  ;;  %823 = vmatprep.mubr.bf16.mxu1 (!%p296_p12), %v968_v1  ;;  %v1089_v3 = vld [vmem:[%s1486_s8 + $0xc] ss:$16 sps:$4 sm:$0xff] (!%p296_p12)   ;;  %v1091_v4 = vld [vmem:[%s1486_s8] ss:$16 sps:$4 sm:$0xff] (!%p296_p12)  }
  0x3e   : > { %750 = vmatprep.subr.bf16.mxu0 (!%p296_p12), %v1087_v2  ;;  %v1092_v5 = vld [vmem:[%s1486_s8 + $0x8] ss:$16 sps:$4 sm:$0xff] (!%p296_p12)   ;;  %791 = vmatprep.subr.bf16.mxu1 (!%p296_p12), %v1089_v3  ;;  %v1093_v6 = vld [vmem:[%s1486_s8 + $0x24] ss:$16 sps:$4 sm:$0xff] (!%p296_p12)   ;;  %v1095_v7 = vld [vmem:[%s1486_s8 + $0x2c] ss:$16 sps:$4 sm:$0xff] (!%p296_p12)   ;;  %v967_v3 = vcombine.low (!%p296_p12), %v1481_v0, %v1481_v0 }
  0x3f   : > { %751 = vmatpush1.bf16.msra.mxu0 (!%p296_p12), %v1091_v4  ;;  %792 = vmatpush1.bf16.msra.mxu1 (!%p296_p12), %v1092_v5  ;;  %v1097_v8 = vld [vmem:[%s1486_s8 + $0x20] ss:$16 sps:$4 sm:$0xff] (!%p296_p12)   ;;  %v1098_v9 = vld [vmem:[%s1486_s8 + $0x28] ss:$16 sps:$4 sm:$0xff] (!%p296_p12)   ;;  %v1099_v10 = vld [vmem:[%s1486_s8 + $0x44] ss:$16 sps:$4 sm:$0xff] (!%p296_p12)   ;;  %v403_v4 = vlaneseq (!%p296_p12) }
  0x40   : > { %752 = vmatprep.subr.bf16.mxu0 (!%p296_p12), %v1093_v6  ;;  %793 = vmatprep.subr.bf16.mxu1 (!%p296_p12), %v1095_v7  ;;  %v1101_v11 = vld [vmem:[%s1486_s8 + $0x4c] ss:$16 sps:$4 sm:$0xff] (!%p296_p12)   ;;  %v1103_v12 = vld [vmem:[%s1486_s8 + $0x40] ss:$16 sps:$4 sm:$0xff] (!%p296_p12)   ;;  %v1104_v13 = vld [vmem:[%s1486_s8 + $0x48] ss:$16 sps:$4 sm:$0xff] (!%p296_p12)  }
  0x41   : > { %v1105_v14 = vld [vmem:[%s1486_s8 + $0x64] ss:$16 sps:$4 sm:$0xff] (!%p296_p12)   ;;  %v1107_v15 = vld [vmem:[%s1486_s8 + $0x6c] ss:$16 sps:$4 sm:$0xff] (!%p296_p12)   ;;  %v1109_v16 = vld [vmem:[%s1486_s8 + $0x60] ss:$16 sps:$4 sm:$0xff] (!%p296_p12)  }
  0x42   : > { %v1110_v17 = vld [vmem:[%s1486_s8 + $0x68] ss:$16 sps:$4 sm:$0xff]   ;;  %v1111_v18 = vld [vmem:[%s1486_s8 + $0x84] ss:$16 sps:$4 sm:$0xff]   ;;  %v1113_v19 = vld [vmem:[%s1486_s8 + $0x8c] ss:$16 sps:$4 sm:$0xff]  }
  0x43   : > { %753 = vmatpush1.bf16.msra.mxu0 %v1097_v8  ;;  %794 = vmatpush1.bf16.msra.mxu1 %v1098_v9  ;;  %v1115_v20 = vld [vmem:[%s1486_s8 + $0x80] ss:$16 sps:$4 sm:$0xff]   ;;  %v1116_v21 = vld [vmem:[%s1486_s8 + $0x88] ss:$16 sps:$4 sm:$0xff]   ;;  %v1117_v22 = vld [vmem:[%s1486_s8 + $0xa4] ss:$16 sps:$4 sm:$0xff]  }
  0x44   : > { %754 = vmatprep.subr.bf16.mxu0 %v1099_v10  ;;  %795 = vmatprep.subr.bf16.mxu1 %v1101_v11  ;;  %v1119_v23 = vld [vmem:[%s1486_s8 + $0xac] ss:$16 sps:$4 sm:$0xff]   ;;  %v1121_v24 = vld [vmem:[%s1486_s8 + $0xa0] ss:$16 sps:$4 sm:$0xff]   ;;  %v1122_v25 = vld [vmem:[%s1486_s8 + $0xa8] ss:$16 sps:$4 sm:$0xff]  }
  0x45   : > { %v1123_v26 = vld [vmem:[%s1486_s8 + $0xc4] ss:$16 sps:$4 sm:$0xff]   ;;  %v1125_v27 = vld [vmem:[%s1486_s8 + $0xcc] ss:$16 sps:$4 sm:$0xff]   ;;  %v1127_v28 = vld [vmem:[%s1486_s8 + $0xc0] ss:$16 sps:$4 sm:$0xff]  }
  0x46   : > { %v1128_v29 = vld [vmem:[%s1486_s8 + $0xc8] ss:$16 sps:$4 sm:$0xff]   ;;  %v1129_v30 = vld [vmem:[%s1486_s8 + $0xe4] ss:$16 sps:$4 sm:$0xff]   ;;  %v1131_v31 = vld [vmem:[%s1486_s8 + $0xec] ss:$16 sps:$4 sm:$0xff]  }
  0x47   : > { %755 = vmatpush1.bf16.msra.mxu0 %v1103_v12  ;;  %796 = vmatpush1.bf16.msra.mxu1 %v1104_v13  ;;  %v1133_v32 = vld [vmem:[%s1486_s8 + $0xe0] ss:$16 sps:$4 sm:$0xff]   ;;  %v1134_v33 = vld [vmem:[%s1486_s8 + $0xe8] ss:$16 sps:$4 sm:$0xff]   ;;  %v1135_v34 = vld [vmem:[%s1486_s8 + $0x104] ss:$16 sps:$4 sm:$0xff]  }
  0x48   : > { %756 = vmatprep.subr.bf16.mxu0 %v1105_v14  ;;  %797 = vmatprep.subr.bf16.mxu1 %v1107_v15  ;;  %v1137_v35 = vld [vmem:[%s1486_s8 + $0x10c] ss:$16 sps:$4 sm:$0xff]   ;;  %v1139_v36 = vld [vmem:[%s1486_s8 + $0x100] ss:$16 sps:$4 sm:$0xff]   ;;  %v1140_v37 = vld [vmem:[%s1486_s8 + $0x108] ss:$16 sps:$4 sm:$0xff]  }
  0x49   : > { %v1141_v38 = vld [vmem:[%s1486_s8 + $0x124] ss:$16 sps:$4 sm:$0xff]   ;;  %v1143_v39 = vld [vmem:[%s1486_s8 + $0x12c] ss:$16 sps:$4 sm:$0xff]   ;;  %v1145_v40 = vld [vmem:[%s1486_s8 + $0x120] ss:$16 sps:$4 sm:$0xff]  }
  0x4a   : > { %v1146_v41 = vld [vmem:[%s1486_s8 + $0x128] ss:$16 sps:$4 sm:$0xff]   ;;  %v1147_v42 = vld [vmem:[%s1486_s8 + $0x144] ss:$16 sps:$4 sm:$0xff]   ;;  %v1149_v43 = vld [vmem:[%s1486_s8 + $0x14c] ss:$16 sps:$4 sm:$0xff]  }
  0x4b   : > { %757 = vmatpush1.bf16.msra.mxu0 %v1109_v16  ;;  %798 = vmatpush1.bf16.msra.mxu1 %v1110_v17  ;;  %v1151_v44 = vld [vmem:[%s1486_s8 + $0x140] ss:$16 sps:$4 sm:$0xff]   ;;  %v1152_v45 = vld [vmem:[%s1486_s8 + $0x148] ss:$16 sps:$4 sm:$0xff]   ;;  %v1153_v46 = vld [vmem:[%s1486_s8 + $0x164] ss:$16 sps:$4 sm:$0xff]  }
  0x4c   : > { %758 = vmatprep.subr.bf16.mxu0 %v1111_v18  ;;  %799 = vmatprep.subr.bf16.mxu1 %v1113_v19  ;;  %v1155_v47 = vld [vmem:[%s1486_s8 + $0x16c] ss:$16 sps:$4 sm:$0xff]   ;;  %v1157_v48 = vld [vmem:[%s1486_s8 + $0x160] ss:$16 sps:$4 sm:$0xff]   ;;  %v1158_v49 = vld [vmem:[%s1486_s8 + $0x168] ss:$16 sps:$4 sm:$0xff]  }
  0x4d   : > { %v1159_v50 = vld [vmem:[%s1486_s8 + $0x184] ss:$16 sps:$4 sm:$0xff]   ;;  %v1161_v51 = vld [vmem:[%s1486_s8 + $0x18c] ss:$16 sps:$4 sm:$0xff]   ;;  %v1163_v52 = vld [vmem:[%s1486_s8 + $0x180] ss:$16 sps:$4 sm:$0xff]  }
  0x4e   : > { %v1164_v53 = vld [vmem:[%s1486_s8 + $0x188] ss:$16 sps:$4 sm:$0xff]   ;;  %v1165_v54 = vld [vmem:[%s1486_s8 + $0x1a4] ss:$16 sps:$4 sm:$0xff]   ;;  %v1167_v55 = vld [vmem:[%s1486_s8 + $0x1ac] ss:$16 sps:$4 sm:$0xff]  }
  0x4f   : > { %759 = vmatpush1.bf16.msra.mxu0 %v1115_v20  ;;  %800 = vmatpush1.bf16.msra.mxu1 %v1116_v21  ;;  %v1169_v56 = vld [vmem:[%s1486_s8 + $0x1a0] ss:$16 sps:$4 sm:$0xff]   ;;  %v1170_v57 = vld [vmem:[%s1486_s8 + $0x1a8] ss:$16 sps:$4 sm:$0xff]   ;;  %v1171_v58 = vld [vmem:[%s1486_s8 + $0x1c4] ss:$16 sps:$4 sm:$0xff]  }
  0x50   : > { %760 = vmatprep.subr.bf16.mxu0 %v1117_v22  ;;  %801 = vmatprep.subr.bf16.mxu1 %v1119_v23  ;;  %v1173_v59 = vld [vmem:[%s1486_s8 + $0x1cc] ss:$16 sps:$4 sm:$0xff]   ;;  %v1175_v60 = vld [vmem:[%s1486_s8 + $0x1c0] ss:$16 sps:$4 sm:$0xff]   ;;  %v1176_v61 = vld [vmem:[%s1486_s8 + $0x1c8] ss:$16 sps:$4 sm:$0xff]  }
  0x51   : > { %v1177_v62 = vld [vmem:[%s1486_s8 + $0x1e4] ss:$16 sps:$4 sm:$0xff]   ;;  %v1179_v63 = vld [vmem:[%s1486_s8 + $0x1ec] ss:$16 sps:$4 sm:$0xff]   ;;  %v1181_v1 = vld [vmem:[%s1486_s8 + $0x1e0] ss:$16 sps:$4 sm:$0xff]  }
  0x52   : > { %v1182_v2 = vld [vmem:[%s1486_s8 + $0x1e8] ss:$16 sps:$4 sm:$0xff]   ;;  %s1618_s9 = smov (!%p331_p13, %s966_s9), 7  ;;  %v404_v5 = vshrl.u32 %v403_v4, 7  ;;  %s965_s19 = sshll.u32 %s1476_s4, 5 }
  0x53   : > { %761 = vmatpush1.bf16.msra.mxu0 %v1121_v24  ;;  %802 = vmatpush1.bf16.msra.mxu1 %v1122_v25  ;;  %s333_s17 = scalar_lea.vmem %s1609_s2, %s1618_s9  ;;  %s1047_s20 = sshll.u32 %s1307_s16, 9 }
  0x54   : > { %762 = vmatprep.subr.bf16.mxu0 %v1123_v26  ;;  %803 = vmatprep.subr.bf16.mxu1 %v1125_v27  ;;  %v405_v6 = vsub.s32 0, %v404_v5  ;;  %v413_v7 = vsub.s32 2, %v404_v5  ;;  %v401_v8 = vld [vmem:[%s333_s17] sm:$0xf]  ;;  %v409_v9 = vsub.s32 1, %v404_v5  ;;  %v417_v10 = vsub.s32 3, %v404_v5  ;;  %s1563_s28 = scalar_lea.hbm %s1610_s3, %s1047_s20 }
  0x55   : > { %s328_s24 = scalar_lea.vmem [#allocation3], %s965_s19  ;;  %s869_s16 = scalar_lea.sflag [#allocation4], %s1476_s4 }
  0x56   : > { %v406_v11 = vrot.slane %v401_v8, %v405_v6  ;;  %v414_v0 = vrot.slane %v401_v8, %v413_v7  ;;  %v410_v12 = vrot.slane %v401_v8, %v409_v9  ;;  %v418_v13 = vrot.slane %v401_v8, %v417_v10  ;;  %s883_s25 = sshll.u32 %s328_s24, 4  ;;  %s1265_s30 = smov [#allocation3]   ;;  %s1565_s25 = int_to_ptr.vmem [resolvable:$true] %s883_s25 }
  0x57   : > { %763 = vmatpush1.bf16.msra.mxu0 %v1127_v28  ;;  %804 = vmatpush1.bf16.msra.mxu1 %v1128_v29  ;;  %s1201_s29 = scalar_lea.vmem %s1565_s25, 512  ;;  %s1205_s5 = sshll.u32 %s1265_s30, 4  ;;  %s1206_s5 = int_to_ptr.vmem [resolvable:$false] %s1205_s5 }
  0x58   : > { %764 = vmatprep.subr.bf16.mxu0 %v1129_v30  ;;  %805 = vmatprep.subr.bf16.mxu1 %v1131_v31  ;;  %p1202_p0 = scmp.ne.s32.totalorder %s1565_s25, %s1201_s29  ;;  %s1207_s6 = scalar_lea.vmem %s1206_s5, 1024 }
  0x59   : > { %p1208_p3 = scmp.lt.s32.totalorder %s1565_s25, %s1206_s5  ;;  %p1209_p4 = scmp.lt.s32.totalorder %s1207_s6, %s1201_s29 }
  0x5a   : > { %p1203_p1 = pnand %p1202_p0, %p1325_p6 }
  0x5b   : > { %765 = vmatpush1.bf16.msra.mxu0 %v1133_v32  ;;  %806 = vmatpush1.bf16.msra.mxu1 %v1134_v33  ;;  %p1210_p5 = por %p1209_p4, %p1208_p3 }
  0x5c   : > { %766 = vmatprep.subr.bf16.mxu0 %v1135_v34  ;;  %807 = vmatprep.subr.bf16.mxu1 %v1137_v35  ;;  %p1204_p2 = pneg %p1203_p1 }
  0x5e   : > { %p1211_p7 = pnand %p1210_p5, %p1204_p2 }
  0x5f   : > { %767 = vmatpush1.bf16.msra.mxu0 %v1139_v36  ;;  %808 = vmatpush1.bf16.msra.mxu1 %v1140_v37 }
  0x60   : > { %768 = vmatprep.subr.bf16.mxu0 %v1141_v38  ;;  %809 = vmatprep.subr.bf16.mxu1 %v1143_v39 }
  0x63   : > { %769 = vmatpush1.bf16.msra.mxu0 %v1145_v40  ;;  %810 = vmatpush1.bf16.msra.mxu1 %v1146_v41 }
  0x64   : > { %770 = vmatprep.subr.bf16.mxu0 %v1147_v42  ;;  %811 = vmatprep.subr.bf16.mxu1 %v1149_v43 }
  0x67   : > { %771 = vmatpush1.bf16.msra.mxu0 %v1151_v44  ;;  %812 = vmatpush1.bf16.msra.mxu1 %v1152_v45 }
  0x68   : > { %772 = vmatprep.subr.bf16.mxu0 %v1153_v46  ;;  %813 = vmatprep.subr.bf16.mxu1 %v1155_v47 }
  0x6b   : > { %773 = vmatpush1.bf16.msra.mxu0 %v1157_v48  ;;  %814 = vmatpush1.bf16.msra.mxu1 %v1158_v49 }
  0x6c   : > { %774 = vmatprep.subr.bf16.mxu0 %v1159_v50  ;;  %815 = vmatprep.subr.bf16.mxu1 %v1161_v51 }
  0x6f   : > { %775 = vmatpush1.bf16.msra.mxu0 %v1163_v52  ;;  %816 = vmatpush1.bf16.msra.mxu1 %v1164_v53 }
  0x70   : > { %776 = vmatprep.subr.bf16.mxu0 %v1165_v54  ;;  %817 = vmatprep.subr.bf16.mxu1 %v1167_v55 }
  0x73   : > { %777 = vmatpush1.bf16.msra.mxu0 %v1169_v56  ;;  %818 = vmatpush1.bf16.msra.mxu1 %v1170_v57 }
  0x74   : > { %778 = vmatprep.subr.bf16.mxu0 %v1171_v58  ;;  %819 = vmatprep.subr.bf16.mxu1 %v1173_v59 }
  0x77   : > { %779 = vmatpush1.bf16.msra.mxu0 %v1175_v60  ;;  %820 = vmatpush1.bf16.msra.mxu1 %v1176_v61 }
  0x78   : > { %780 = vmatprep.subr.bf16.mxu0 %v1177_v62  ;;  %821 = vmatprep.subr.bf16.mxu1 %v1179_v63 }
  0x7b   : > { %781 = vmatpush1.bf16.msra.mxu0 %v1181_v1  ;;  %822 = vmatpush1.bf16.msra.mxu1 %v1182_v2 }
  0x7e   : > { %783 = vmatmul.mubr.bf16.vlgmr.msra.gmra.mrb[0].mxu0 %v967_v3  ;;  %824 = vmatmul.mubr.bf16.vlgmr.msra.gmra.mrb[0].mxu1 %v967_v3 }
 0x151   : > { %v784_v14 = vpop.f32.mrb[0].mxu0  ;;  %v825_v15 = vpop.f32.mrb[0].mxu1 }
 0x152   : > { %v785_v16 = vadd.f32 %v784_v14, %v406_v11  ;;  %v826_v17 = vadd.f32 %v825_v15, %v414_v0  ;;  %v786_v18 = vpop.f32.mrb[1].mxu0  ;;  %v827_v19 = vpop.f32.mrb[1].mxu1 }
 0x153   : > { %v787_v20 = vadd.f32 %v786_v18, %v410_v12  ;;  %v828_v21 = vadd.f32 %v827_v19, %v418_v13  ;;  %v788_v22 = vpop.f32.mrb[2].mxu0  ;;  %v829_v23 = vpop.f32.mrb[2].mxu1 }
 0x154   : > { %v1033_v24 = vmul.f32 -1.442695, %v785_v16  ;;  %v1035_v25 = vmul.f32 -1.442695, %v826_v17  ;;  %v789_v26 = vpop.f32.mrb[3].mxu0  ;;  %v830_v27 = vpop.f32.mrb[3].mxu1 }
 0x155   : > { %v1034_v28 = vmul.f32 -1.442695, %v787_v20  ;;  %v1036_v29 = vmul.f32 -1.442695, %v828_v21 }
 0x156   : > { %1185 = vpow2.f32 %v1033_v24 }
 0x157   : > { %1187 = vpow2.f32 %v1035_v25 }
 0x158   : > { %1189 = vpow2.f32 %v1034_v28 }
 0x159   : > { %1191 = vpow2.f32 %v1036_v29 }
 0x160   : > { %v1186_v30 = vpop.eup %1185 }
 0x161   : > { %v1188_v31 = vpop.eup %1187  ;;  %v844_v32 = vadd.f32 1.0, %v1186_v30 }
 0x162   : > { %v1190_v33 = vpop.eup %1189  ;;  %v846_v34 = vadd.f32 1.0, %v1188_v31 }
 0x163   : > { %v1192_v35 = vpop.eup %1191  ;;  %1193 = vrcp.f32 %v844_v32  ;;  %v845_v36 = vadd.f32 1.0, %v1190_v33 }
 0x164   : > { %1195 = vrcp.f32 %v846_v34  ;;  %v847_v37 = vadd.f32 1.0, %v1192_v35 }
 0x165   : > { %1197 = vrcp.f32 %v845_v36 }
 0x166   : > { %1199 = vrcp.f32 %v847_v37 }
 0x16d   : > { %v1194_v38 = vpop.eup %1193 }
 0x16e   : > { %v1196_v39 = vpop.eup %1195  ;;  %v1037_v40 = vadd.f32 -0.5, %v1194_v38 }
 0x16f   : > { %v1198_v41 = vpop.eup %1197  ;;  %v1039_v42 = vadd.f32 -0.5, %v1196_v39 }
 0x170   : > { %v1200_v43 = vpop.eup %1199  ;;  %v860_v44 = vmul.f32 2.0, %v1037_v40  ;;  %v1038_v45 = vadd.f32 -0.5, %v1198_v41 }
 0x171   : > { %v862_v46 = vmul.f32 2.0, %v1039_v42  ;;  %v1040_v47 = vadd.f32 -0.5, %v1200_v43 }
 0x172   : > { %864 = vst [vmem:[%s328_s24] sm:$0xff] %v860_v44  ;;  %v861_v48 = vmul.f32 2.0, %v1038_v45 }
 0x173   : > { %866 = vst [vmem:[%s328_s24 + $0x10] sm:$0xff] %v862_v46  ;;  %v863_v49 = vmul.f32 2.0, %v1040_v47 }
 0x174   : > { %865 = vst [vmem:[%s328_s24 + $0x8] sm:$0xff] %v861_v48 }
 0x175   : > { %867 = vst [vmem:[%s328_s24 + $0x18] sm:$0xff] %v863_v49 }
 0x176   : > { %1214 = shalt.err (!%p1211_p7)
}
 0x177   : > { %s1215_s4 = scalar_lea.hbm %s1563_s28, 512  ;;  %s1219_s9 = scalar_lea.hbm %s1610_s3, 1024 }
 0x178   : > { %p1216_p10 = scmp.ne.s32.totalorder %s1563_s28, %s1215_s4  ;;  %p1220_p13 = scmp.lt.u32.totalorder %s1563_s28, %s1610_s3 }
 0x179   : > { %p1221_p0 = scmp.lt.u32.totalorder %s1219_s9, %s1215_s4  ;;  %p1223_p2 = scmp.lt.u32.totalorder %s1215_s4, %s1563_s28 }
 0x17a   : > { %p1217_p11 = pnand %p1216_p10, %p1325_p6 }
 0x17b   : > { %p1222_p1 = por %p1221_p0, %p1220_p13 }
 0x17c   : > { %p1218_p12 = pneg %p1217_p11 }
 0x17d   : > { %p1224_p3 = por %p1223_p2, %p1222_p1 }
 0x17f   : > { %p1225_p4 = pnand %p1224_p3, %p1218_p12 }
 0x181   : > { %1228 = shalt.err (!%p1225_p4)
}
 0x182   : > { %1048 = dma.vmem_to_hbm [thread:$0]  (%p1325_p6), %s1565_s25, 512, %s1563_s28, %s869_s16  }
 0x183 PF: > { %s895_s17 = sand.u32 1, %s1251_s12   ;;  %p1051_p5 = pnand %p959_p9, %p1329_p8 }
 0x184   : > { %s896_s19 = scalar_lea.sflag [#allocation4], %s895_s17 }
 0x185   : > { %1246 = dma.done.wait (!%p1051_p5), %s896_s19, 512  }
 0x186   : > { %1248 = vsyncadd (!%p1051_p5), %s896_s19, 4294966784  ;;  %p13_p7 = scmp.ge.s32.totalorder %s1311_s18, 4   ;;  %s1613_s12 = smov %s1255_s13 }
 0x187   : > { %s1614_s13 = smov %s1259_s14  ;;  %s1615_s14 = smov %s1323_s21 }
 0x188   : > { %s1616_s15 = smov %s1311_s18  ;;  %15 = sbr.rel (!%p13_p7) target bundleno = 3 (0x3), region = 98 }
 0x18f   :  { %901 = vsyncpa [#allocation4], 1 }
 0x190   :  { %903 = vsyncpa [#allocation4 + $0x1], 1 }

// kernel: voice_synthesizer.2
= control target key start
LH: loop header
LB: loop body
LE: loop exit
PB: predicated region body
PF: predicated region fallthrough
CT: control target
= control target key end

     0   :  { %s1842_s0 = inlined_call_operand.vmem [shape: bf16[8,1024], index: 0, kind: input, shape index: {}]   ;;  %s1843_s1 = inlined_call_operand.hbm [shape: bf16[1024,256], index: 1, kind: input, shape index: {}]   ;;  %s1844_s2 = inlined_call_operand.vmem [shape: bf16[8,128], index: 2, kind: input, shape index: {}]   ;;  %s1845_s3 = inlined_call_operand.hbm [shape: bf16[128,256], index: 3, kind: input, shape index: {}]   ;;  %s1846_s4 = inlined_call_operand.hbm [shape: f32[1,256], index: 4, kind: input, shape index: {}]   ;;  %s1847_s5 = inlined_call_operand.vmem [shape: bf16[8,256], index: 5, kind: output, shape index: {}]  }
   0x1   :  { %1864 = sst [smem:[#allocation15_spill]] %s1842_s0 }
   0x2   :  { %1865 = sst [smem:[#allocation16_spill]] %s1844_s2 }
   0x3   :  { %1866 = sst [smem:[#allocation17_spill]] %s1845_s3 }
   0x4   :  { %1867 = sst [smem:[#allocation18_spill]] %s1847_s5 }
   0x5   :  { %10 = vsyncpa [#allocation4], 0 }
   0x6   :  { %12 = vsyncpa [#allocation4 + $0x1], 0 }
   0x7   :  { %13 = vsyncpa [#allocation6], 0 }
   0x8   :  { %15 = vsyncpa [#allocation6 + $0x1], 0  ;;  %s1481_s18 = smov 0   ;;  %s1483_s19 = smov 0  }
   0x9   :  { %s1485_s20 = smov 0   ;;  %s1487_s21 = smov 0  }
   0xa   :  { %s1489_s22 = smov 0   ;;  %s1491_s23 = smov 0  }
   0xb   :  { %s1493_s24 = smov 0   ;;  %s1495_s25 = smov 0  }
   0xc   :  { %s1497_s26 = smov 0   ;;  %s1499_s27 = smov 0  }
   0xd   :  { %s1501_s28 = smov 0  }
   0xe LB: > { %1868 = sst [smem:[#allocation10_spill]] %s1425_s24  ;;  %s1848_s29 = sadd.s32 4294967295, %s1441_s28   ;;  %s1441_s28 = sphi %s1501_s28, %s21_s28   ;;  %s1437_s27 = sphi %s1499_s27, %s1913_s27   ;;  %s1433_s26 = sphi %s1497_s26, %s1912_s26   ;;  %s1429_s25 = sphi %s1495_s25, %s1911_s25   ;;  %s1425_s24 = sphi %s1493_s24, %s1903_s24   ;;  %s1421_s23 = sphi %s1491_s23, %s1910_s23   ;;  %s1417_s22 = sphi %s1489_s22, %s1909_s22   ;;  %s1413_s21 = sphi %s1487_s21, %s1908_s21   ;;  %s1409_s20 = sphi %s1485_s20, %s1907_s20   ;;  %s1405_s19 = sphi %s1483_s19, %s1906_s19   ;;  %s1401_s18 = sphi %s1481_s18, %s1905_s18  }
   0xf   : > { %1869 = sst [smem:[#allocation11_spill]] %s1429_s25  ;;  %p1850_p0 = scmp.eq.s32.totalorder %s1441_s28, 0 }
  0x10   : > { %1870 = sst [smem:[#allocation12_spill]] %s1433_s26  ;;  %p1538_p1 = scmp.eq.s32.totalorder %s1848_s29, 0 }
  0x11   : > { %p122_p2 = scmp.ne.s32.totalorder %s1409_s20, %s1405_s19  ;;  %p128_p3 = scmp.ne.s32.totalorder %s1405_s19, %s1401_s18 }
  0x12   : > { %p1849_p4 = scmp.lt.s32.totalorder %s1441_s28, 4  ;;  %s239_s8 = sand.u32 1, %s1441_s28  }
  0x13   : > { %p124_p5 = por %p122_p2, %p1850_p0  ;;  %p1551_p6 = por %p128_p3, %p1538_p1 }
  0x14   : > { %s1852_s9 = sand.u32 1, %s1409_s20   ;;  %s972_s11 = sshll.u32 %s1437_s27, 6 }
  0x15   : > { %s1872_s7 = scalar_select %p1551_p6, 1, 0 }
  0x16   : > { %s971_s10 = sshll.u32 %s1852_s9, 6  ;;  %s1874_s3 = sld [smem:[#allocation17_spill]] }
  0x17   : > { %1873 = sst [smem:[#allocation13_spill]] %s1872_s7  ;;  %s243_s15 = scalar_lea.vmem [#allocation5], %s971_s10 }
  0x18   : > { %s249_s16 = sshll.u32 %s243_s15, 4  ;;  %p1567_p7 = pnand %p1849_p4, %p124_p5  ;;  %s1571_s16 = int_to_ptr.vmem [resolvable:$true] %s249_s16 }
  0x19   : > { %s1575_s18 = scalar_lea.sflag [#allocation6], %s239_s8 }
  0x1a   : > { %p1862_p11 = pneg %p1567_p7 }
  0x1c   : > { %s1563_s14 = scalar_lea.hbm %s1874_s3, %s972_s11  ;;  %s1262_s13 = scalar_lea.hbm %s1874_s3, 2048 }
  0x1d   : > { %s1257_s11 = scalar_lea.hbm %s1563_s14, 1024  ;;  %p1263_p2 = scmp.lt.u32.totalorder %s1563_s14, %s1874_s3 }
  0x1e   : > { %p1258_p10 = scmp.ne.s32.totalorder %s1563_s14, %s1257_s11  ;;  %p1264_p3 = scmp.lt.u32.totalorder %s1262_s13, %s1257_s11 }
  0x1f   : > { %p1266_p4 = scmp.lt.u32.totalorder %s1257_s11, %s1563_s14 }
  0x20   : > { %p1260_p12 = pnand %p1862_p11, %p1258_p10  ;;  %p1265_p5 = por %p1264_p3, %p1263_p2 }
  0x22   : > { %p1261_p13 = pneg %p1260_p12  ;;  %p1267_p0 = por %p1266_p4, %p1265_p5 }
  0x24   : > { %p1268_p8 = pnand %p1267_p0, %p1261_p13 }
  0x26   : > { %1271 = shalt.err (!%p1268_p8)
}
  0x27   : > { %s1272_s8 = scalar_lea.vmem %s1571_s16, 1024  ;;  %s1443_s10 = smov [#allocation5]  }
  0x28   : > { %p1273_p10 = scmp.ne.s32.totalorder %s1571_s16, %s1272_s8  ;;  %s1277_s12 = sshll.u32 %s1443_s10, 4  ;;  %s1278_s12 = int_to_ptr.vmem [resolvable:$false] %s1277_s12 }
  0x29   : > { %s1279_s29 = scalar_lea.vmem %s1278_s12, 2048  ;;  %p1280_p6 = scmp.lt.s32.totalorder %s1571_s16, %s1278_s12 }
  0x2a   : > { %p1275_p12 = pnand %p1273_p10, %p1862_p11  ;;  %p1281_p2 = scmp.lt.s32.totalorder %s1279_s29, %s1272_s8 }
  0x2c   : > { %p1276_p9 = pneg %p1275_p12  ;;  %p1282_p3 = por %p1281_p2, %p1280_p6 }
  0x2e   : > { %p1283_p4 = pnand %p1282_p3, %p1276_p9 }
  0x30   : > { %1286 = shalt.err (!%p1283_p4)
}
  0x31   : > { %s1853_s11 = smov 128   ;;  %s1854_s13 = smov 64  }
  0x32   : > { %s1855_s15 = smov 4   ;;  %p1876_p0 = scmp.lt.s32.totalorder %s1441_s28, 5 }
  0x33   : > { %1115 = dma.hbm_to_vmem [thread:$0]  (!%p1567_p7), %s1563_s14, 1024, %s1571_s16, %s1575_s18, %s1853_s11, %s1854_s13, %s1855_s15  }
  0x34   : > { %p1877_p6 = scmp.ge.s32.totalorder %s1441_s28, 1  ;;  %s30_s10 = sadd.s32 1, %s1433_s26 }
  0x35   : > { %p31_p9 = scmp.ge.s32.totalorder %s30_s10, 2  ;;  %s33_s12 = sadd.s32 1, %s1437_s27 }
  0x36   : > { %p1610_p8 = pnand %p1877_p6, %p1876_p0  ;;  %s68_s29 = sadd.s32 1, %s1421_s23 }
  0x37   : > { %p75_p13 = scmp.ne.s32.totalorder %s1421_s23, %s1417_s22  ;;  %s1915_s10 = smov (%p31_p9, %s30_s10), 0 }
  0x38   : > { %s1878_s8 = scalar_select %p1610_p8, 1, 0 }
  0x39   : > { %1879 = sst [smem:[#allocation14_spill]] %s1915_s10  ;;  %s1917_s12 = smov (!%p31_p9, %s33_s12), %s1437_s27 }
  0x3a   : > { %s63_s14 = ssub.s32 %s1433_s26, %s1915_s10  ;;  %p1880_p5 = scmp.eq.s32.totalorder %s1441_s28, 0 }
  0x3b   : > { %p35_p12 = scmp.ge.s32.totalorder %s1917_s12, 2  ;;  %p81_p2 = scmp.ne.s32.totalorder %s1417_s22, %s1413_s21 }
  0x3c   : > { %p1626_p10 = por %p1880_p5, %p75_p13  ;;  %s216_s9 = sand.u32 1, %s1421_s23  }
  0x3d   : > { %s1029_s11 = sshll.u32 %s1433_s26, 7  ;;  %s1919_s12 = smov (%p35_p12, %s1917_s12), 0 }
  0x3e   : > { %p1638_p3 = por %p1538_p1, %p81_p2  ;;  %s64_s15 = ssub.s32 %s1437_s27, %s1919_s12 }
  0x3f   : > { %s967_s6 = sshll.u32 %s216_s9, 8  ;;  %s65_s3 = sor.u32 %s64_s15, %s63_s14 }
  0x40   : > { %s1882_s13 = scalar_select %p1638_p3, 1, 0 }
  0x41   : > { %p113_p4 = scmp.eq.s32.totalorder %s64_s15, 0  ;;  %p66_p0 = scmp.eq.s32.totalorder %s65_s3, 0 }
  0x42   : > { %s1883_s10 = sadd.s32 1, %s1409_s20  ;;  %s226_s2 = sadd.s32 %s1437_s27, %s1029_s11 }
  0x43   : > { %s1647_s21 = scalar_select %p113_p4, %s1409_s20, %s1883_s10  }
  0x44   : > { %s1650_s26 = scalar_select %p66_p0, %s1421_s23, %s68_s29  }
  0x45   : > { %s220_s5 = scalar_lea.vmem [#allocation3], %s967_s6  ;;  %s970_s30 = sshll.u32 %s226_s2, 6 }
  0x46   : > { %s229_s0 = sshll.u32 %s220_s5, 4  ;;  %s1658_s7 = scalar_lea.hbm %s1843_s1, %s970_s30  ;;  %s1653_s0 = int_to_ptr.vmem [resolvable:$true] %s229_s0 }
  0x47   : > { %p1884_p1 = scmp.lt.s32.totalorder %s1441_s28, 4  ;;  %s973_s2 = sshll.u32 %s1437_s27, 4 }
  0x48   : > { %s1672_s11 = scalar_lea.hbm %s1846_s4, %s973_s2  ;;  %s1674_s24 = scalar_lea.sflag [#allocation4], %s216_s9 }
  0x49   : > { %p1664_p6 = pnand %p1884_p1, %p1626_p10  ;;  %s1287_s25 = scalar_lea.hbm %s1658_s7, 4096 }
  0x4a   : > { %p1288_p9 = scmp.ne.s32.totalorder %s1658_s7, %s1287_s25  ;;  %s1292_s29 = scalar_lea.hbm %s1843_s1, 16384 }
  0x4b   : > { %p1289_p13 = pneg %p1664_p6  ;;  %p1293_p12 = scmp.lt.u32.totalorder %s1658_s7, %s1843_s1 }
  0x4c   : > { %p1294_p2 = scmp.lt.u32.totalorder %s1292_s29, %s1287_s25  ;;  %p1296_p0 = scmp.lt.u32.totalorder %s1287_s25, %s1658_s7 }
  0x4d   : > { %p1290_p5 = pnand %p1289_p13, %p1288_p9 }
  0x4e   : > { %p1295_p4 = por %p1294_p2, %p1293_p12 }
  0x4f   : > { %p1291_p10 = pneg %p1290_p5 }
  0x50   : > { %p1297_p1 = por %p1296_p0, %p1295_p4 }
  0x52   : > { %p1298_p11 = pnand %p1297_p1, %p1291_p10 }
  0x54   : > { %1301 = shalt.err (!%p1298_p11)
}
  0x55   : > { %s1302_s9 = scalar_lea.vmem %s1653_s0, 4096  ;;  %s1447_s30 = smov [#allocation3]  }
  0x56   : > { %p1303_p9 = scmp.ne.s32.totalorder %s1653_s0, %s1302_s9  ;;  %s1307_s2 = sshll.u32 %s1447_s30, 4  ;;  %s1308_s2 = int_to_ptr.vmem [resolvable:$false] %s1307_s2 }
  0x57   : > { %s1309_s5 = scalar_lea.vmem %s1308_s2, 8192  ;;  %p1310_p8 = scmp.lt.s32.totalorder %s1653_s0, %s1308_s2 }
  0x58   : > { %p1305_p5 = pnand %p1303_p9, %p1289_p13  ;;  %p1311_p12 = scmp.lt.s32.totalorder %s1309_s5, %s1302_s9 }
  0x5a   : > { %p1306_p3 = pneg %p1305_p5  ;;  %p1312_p2 = por %p1311_p12, %p1310_p8 }
  0x5c   : > { %p1313_p4 = pnand %p1312_p2, %p1306_p3 }
  0x5e   : > { %1316 = shalt.err (!%p1313_p4)
}
  0x5f   : > { %s1886_s6 = smov 4   ;;  %s1887_s25 = smov 64  }
  0x60   : > { %s1888_s15 = smov 128   ;;  %s1889_s10 = sand.u32 1, %s1409_s20  }
  0x61   : > { %1112 = dma.hbm_to_vmem [thread:$0]  (!%p1664_p6), %s1658_s7, 4096, %s1653_s0, %s1674_s24, %s1888_s15, %s1887_s25, %s1886_s6  }
  0x62   : > { %s262_s29 = scalar_lea.vmem [#allocation7], %s1889_s10  ;;  %s1317_s16 = scalar_lea.hbm %s1672_s11, 16 }
  0x63   : > { %s269_s14 = sshll.u32 %s262_s29, 4  ;;  %p1318_p11 = scmp.ne.s32.totalorder %s1672_s11, %s1317_s16  ;;  %s270_s14 = int_to_ptr.vmem [resolvable:$true] %s269_s14 }
  0x64   : > { %p1890_p8 = pneg %p1567_p7  ;;  %s1322_s30 = scalar_lea.hbm %s1846_s4, 32 }
  0x65   : > { %p1323_p10 = scmp.lt.u32.totalorder %s1672_s11, %s1846_s4  ;;  %p1324_p0 = scmp.lt.u32.totalorder %s1322_s30, %s1317_s16 }
  0x66   : > { %p1320_p3 = pnand %p1318_p11, %p1890_p8  ;;  %p1326_p1 = scmp.lt.u32.totalorder %s1317_s16, %s1672_s11 }
  0x67   : > { %p1325_p6 = por %p1324_p0, %p1323_p10 }
  0x68   : > { %p1321_p13 = pneg %p1320_p3 }
  0x69   : > { %p1327_p9 = por %p1326_p1, %p1325_p6 }
  0x6b   : > { %p1328_p5 = pnand %p1327_p9, %p1321_p13 }
  0x6d   : > { %1331 = shalt.err (!%p1328_p5)
}
  0x6e   : > { %s1332_s0 = scalar_lea.vmem %s270_s14, 16  ;;  %p1891_p2 = pmov %p1890_p8 }
  0x6f   : > { %p1333_p12 = scmp.ne.s32.totalorder %s270_s14, %s1332_s0  ;;  %s1448_s7 = smov [#allocation7]  }
  0x70   : > { %s1337_s24 = sshll.u32 %s1448_s7, 4  ;;  %s1338_s24 = int_to_ptr.vmem [resolvable:$false] %s1337_s24 }
  0x71   : > { %p1335_p4 = pnand %p1333_p12, %p1891_p2  ;;  %s1339_s6 = scalar_lea.vmem %s1338_s24, 32 }
  0x72   : > { %p1340_p8 = scmp.lt.s32.totalorder %s270_s14, %s1338_s24  ;;  %p1341_p3 = scmp.lt.s32.totalorder %s1339_s6, %s1332_s0 }
  0x73   : > { %p1336_p11 = pneg %p1335_p4 }
  0x74   : > { %p1342_p0 = por %p1341_p3, %p1340_p8 }
  0x76   : > { %p1343_p10 = pnand %p1342_p0, %p1336_p11 }
  0x78   : > { %1346 = shalt.err (!%p1343_p10)
}
  0x79   : > { %1118 = dma.hbm_to_vmem [thread:$0]  (!%p1567_p7), %s1672_s11, 16, %s270_s14, %s1575_s18  }
  0x7a   : > { %p1892_p13 = scmp.ne.s32.totalorder %s1878_s8, 0 }
  0x7b   : > { %s280_s25 = sand.u32 (!%p1892_p13), 1, %s1417_s22   ;;  %p1893_p6 = scmp.ne.s32.totalorder (!%p1892_p13), %s1882_s13, 0 }
  0x7c   : > { %278 = sbr.rel (%p1892_p13) target bundleno = 664 (0x298), region = 40  ;;  %s975_s15 = sshll.u32 (!%p1892_p13), %s280_s25, 8 }
  0x7d   : > { %s281_s10 = scalar_lea.sflag (!%p1892_p13), [#allocation4], %s280_s25  ;;  %s1730_s29 = scalar_lea.vmem (!%p1892_p13), [#allocation3], %s975_s15 }
  0x83   : > { %1392 = dma.done.wait (%p1893_p6), %s281_s10, 4096  }
  0x84   : > { %1394 = vsyncadd (%p1893_p6), %s281_s10, 4294963200  ;;  %s1894_s17 = sadd.s32 4294967295, %s1441_s28   ;;  %s1895_s16 = sld [smem:[#allocation13_spill]] }
  0x85   : > { %s289_s18 = sand.u32 1, %s1894_s17   ;;  %s291_s11 = sand.u32 1, %s1405_s19  }
  0x86   : > { %s976_s8 = sshll.u32 %s291_s11, 6  ;;  %s290_s14 = scalar_lea.sflag [#allocation6], %s289_s18 }
  0x87   : > { %s1739_s3 = scalar_lea.vmem [#allocation5], %s976_s8 }
  0x8a   : > { %p1896_p7 = scmp.ne.s32.totalorder %s1895_s16, 0 }
  0x8c   : > { %1396 = dma.done.wait (%p1896_p7), %s290_s14, 1040  }
  0x8d   : > { %1398 = vsyncadd (%p1896_p7), %s290_s14, 4294966256  ;;  %s1897_s9 = sld [smem:[#allocation10_spill]]  ;;  %s1898_s30 = sld [smem:[#allocation11_spill]] }
  0x8e   : > { %s1899_s7 = sld [smem:[#allocation15_spill]]  ;;  %s1900_s10 = sld [smem:[#allocation18_spill]] }
  0x8f   : > { %s1758_s16 = scalar_lea.vmem [#allocation7], %s291_s11 }
  0x93   : > { %s977_s13 = sshll.u32 %s1897_s9, 2  ;;  %p348_p9 = scmp.lt.s32.totalorder %s1898_s30, 1 }
  0x94   : > { %p342_p1 = scmp.lt.s32.totalorder %s977_s13, 7  ;;  %p980_p5 = scmp.ne.s32.totalorder %s1897_s9, 0 }
  0x95   : > { %s1923_s30 = smov (!%p348_p9, %s1898_s30), 1  ;;  %v1213_v0 = vld [vmem:[%s1739_s3] sm:$0xff] (!%p980_p5)   ;;  %v1449_v1 = vmov (!%p980_p5), 0.0   ;;  %v1214_v2 = vld [vmem:[%s1739_s3 + $0x8] sm:$0xff] (!%p980_p5)   ;;  %vm1450_vm0 = vmmov (!%p980_p5), 0   ;;  %v1215_v3 = vld [vmem:[%s1739_s3 + $0x10] sm:$0xff] (!%p980_p5)  }
  0x96   : > { %s1921_s13 = smov (!%p342_p1, %s977_s13), 7  ;;  %s979_s6 = sshll.u32 %s1923_s30, 2  ;;  %1083 = vmatprep.subr.bf16.mxu0 (!%p980_p5), %v1449_v1  ;;  %1099 = vmatprep.mubr.msk.bf16.mxu0 (!%p980_p5), %vm1450_vm0, %v1449_v1  ;;  %v1216_v4 = vld [vmem:[%s1739_s3 + $0x18] sm:$0xff] (!%p980_p5)   ;;  %v1217_v5 = vld [vmem:[%s1739_s3 + $0x20] sm:$0xff] (!%p980_p5)   ;;  %v1218_v6 = vld [vmem:[%s1739_s3 + $0x28] sm:$0xff] (!%p980_p5)  }
  0x97   : > { %s978_s2 = sshll.u32 %s1921_s13, 2  ;;  %s1756_s17 = scalar_lea.vmem %s1900_s10, %s979_s6  ;;  %1084 = vmatpush3.bf16.msra.mxu0 (!%p980_p5), %v1213_v0  ;;  %v1219_v7 = vld [vmem:[%s1739_s3 + $0x30] sm:$0xff] (!%p980_p5)   ;;  %v1220_v8 = vld [vmem:[%s1739_s3 + $0x38] sm:$0xff] (!%p980_p5)  }
  0x98   : > { %s1751_s24 = scalar_lea.vmem %s1899_s7, %s978_s2  ;;  %356 = sbr.rel (%p980_p5) target bundleno = 397 (0x18d), region = 56  ;;  %1085 = vmatprep.subr.bf16.mxu0 (!%p980_p5), %v1449_v1  ;;  %v981_v10 = vld [vmem:[%s1758_s16] ss:$0 sm:$0xff] (!%p980_p5) }
  0x99   : > { %s1901_s8 = sld [smem:[#allocation16_spill]] (!%p980_p5) }
  0x9b   : > { %1086 = vmatpush3.bf16.msra.mxu0 (!%p980_p5), %v1214_v2 }
  0x9c   : > { %1087 = vmatprep.subr.bf16.mxu0 (!%p980_p5), %v1449_v1 }
  0x9f   : > { %1088 = vmatpush3.bf16.msra.mxu0 %v1215_v3  ;;  %v357_v9 = vld [vmem:[%s1901_s8] sm:$0xf] }
  0xa0   : > { %1089 = vmatprep.subr.bf16.mxu0 %v1449_v1 }
  0xa3   : > { %1090 = vmatpush3.bf16.msra.mxu0 %v1216_v4 }
  0xa4   : > { %1091 = vmatprep.subr.bf16.mxu0 %v1449_v1 }
  0xa7   : > { %1092 = vmatpush3.bf16.msra.mxu0 %v1217_v5 }
  0xa8   : > { %1093 = vmatprep.subr.bf16.mxu0 %v1449_v1 }
  0xab   : > { %1094 = vmatpush3.bf16.msra.mxu0 %v1218_v6 }
  0xac   : > { %1095 = vmatprep.subr.bf16.mxu0 %v1449_v1 }
  0xaf   : > { %1096 = vmatpush3.bf16.msra.mxu0 %v1219_v7 }
  0xb0   : > { %1097 = vmatprep.subr.bf16.mxu0 %v1449_v1 }
  0xb3   : > { %1098 = vmatpush3.bf16.msra.mxu0 %v1220_v8 }
  0xb6   : > { %1100 = vmatmul.mubr.bf16.vlgmr.msra.gmra.mrb[0].mxu0 %v357_v9 }
 0x189   : > { %v463_v11 = vpop.f32.mrb[0].mxu0 }
 0x18a   : > { %v464_v12 = vadd.f32 %v981_v10, %v463_v11  ;;  %v1101_v13 = vpop.f32.mrb[1].mxu0 }
 0x18b   : > { %v466_v14 = vpop.f32.mrb[2].mxu0 }
 0x18c   : > { %469 = vst [vmem:[#allocation2] sm:$0xff] %v464_v12  ;;  %v1102_v15 = vpop.f32.mrb[3].mxu0 }
 0x18d PF: > { %v1221_v16 = vld [vmem:[%s1730_s29 + $0x40] sm:$0xff]   ;;  %v1225_v20 = vld [vmem:[%s1730_s29 + $0x48] sm:$0xff]   ;;  %v1229_v24 = vld [vmem:[%s1730_s29 + $0x50] sm:$0xff]  }
 0x18e   : > { %v1222_v17 = vld [vmem:[%s1730_s29 + $0xc0] sm:$0xff]   ;;  %1039 = vmatprep.subr.bf16.mxu0 %v1221_v16  ;;  %v1226_v21 = vld [vmem:[%s1730_s29 + $0xc8] sm:$0xff]   ;;  %v1230_v25 = vld [vmem:[%s1730_s29 + $0xd0] sm:$0xff]  }
 0x18f   : > { %v1223_v18 = vld [vmem:[%s1730_s29] sm:$0xff]   ;;  %1061 = vmatprep.subr.bf16.mxu1 %v1222_v17  ;;  %v1227_v22 = vld [vmem:[%s1730_s29 + $0x8] sm:$0xff]   ;;  %v1231_v26 = vld [vmem:[%s1730_s29 + $0x10] sm:$0xff]  }
 0x190   : > { %v1224_v19 = vld [vmem:[%s1730_s29 + $0x80] sm:$0xff]   ;;  %1040 = vmatpush3.bf16.msra.mxu0 %v1223_v18  ;;  %v1228_v23 = vld [vmem:[%s1730_s29 + $0x88] sm:$0xff]   ;;  %v1232_v27 = vld [vmem:[%s1730_s29 + $0x90] sm:$0xff]  }
 0x191   : > { %1062 = vmatpush3.bf16.msra.mxu1 %v1224_v19  ;;  %1041 = vmatprep.subr.bf16.mxu0 %v1225_v20  ;;  %v1233_v28 = vld [vmem:[%s1730_s29 + $0x58] sm:$0xff]   ;;  %v1237_v32 = vld [vmem:[%s1730_s29 + $0x60] sm:$0xff]   ;;  %v1241_v36 = vld [vmem:[%s1730_s29 + $0x68] sm:$0xff]  }
 0x192   : > { %1063 = vmatprep.subr.bf16.mxu1 %v1226_v21  ;;  %v1234_v29 = vld [vmem:[%s1730_s29 + $0xd8] sm:$0xff]   ;;  %v1238_v33 = vld [vmem:[%s1730_s29 + $0xe0] sm:$0xff]   ;;  %v1242_v37 = vld [vmem:[%s1730_s29 + $0xe8] sm:$0xff]  }
 0x193   : > { %v1235_v30 = vld [vmem:[%s1730_s29 + $0x18] sm:$0xff]   ;;  %v1239_v34 = vld [vmem:[%s1730_s29 + $0x20] sm:$0xff]   ;;  %v1243_v38 = vld [vmem:[%s1730_s29 + $0x28] sm:$0xff]  }
 0x194   : > { %1042 = vmatpush3.bf16.msra.mxu0 %v1227_v22  ;;  %v1236_v31 = vld [vmem:[%s1730_s29 + $0x98] sm:$0xff]   ;;  %v1240_v35 = vld [vmem:[%s1730_s29 + $0xa0] sm:$0xff]   ;;  %v1244_v39 = vld [vmem:[%s1730_s29 + $0xa8] sm:$0xff]  }
 0x195   : > { %1064 = vmatpush3.bf16.msra.mxu1 %v1228_v23  ;;  %1043 = vmatprep.subr.bf16.mxu0 %v1229_v24  ;;  %v1245_v40 = vld [vmem:[%s1730_s29 + $0x70] sm:$0xff]   ;;  %v1249_v44 = vld [vmem:[%s1730_s29 + $0x78] sm:$0xff]   ;;  %v472_v49 = vld [vmem:[%s1751_s24 + $0x8] sm:$0xff] }
 0x196   : > { %1065 = vmatprep.subr.bf16.mxu1 %v1230_v25  ;;  %v1246_v41 = vld [vmem:[%s1730_s29 + $0xf0] sm:$0xff]   ;;  %v1250_v45 = vld [vmem:[%s1730_s29 + $0xf8] sm:$0xff]   ;;  %v992_v52 = vcombine.low %v472_v49, %v472_v49  ;;  %v993_v53 = vcombine.high %v472_v49, %v472_v49 }
 0x197   : > { %v1247_v42 = vld [vmem:[%s1730_s29 + $0x30] sm:$0xff]   ;;  %v1251_v46 = vld [vmem:[%s1730_s29 + $0x38] sm:$0xff]  }
 0x198   : > { %1044 = vmatpush3.bf16.msra.mxu0 %v1231_v26  ;;  %v1248_v43 = vld [vmem:[%s1730_s29 + $0xb0] sm:$0xff]   ;;  %v1252_v47 = vld [vmem:[%s1730_s29 + $0xb8] sm:$0xff]   ;;  %815 = vmatprep.mubr.bf16.mxu1 %v993_v53  ;;  %s1902_s29 = sld [smem:[#allocation10_spill]] }
 0x199   : > { %1066 = vmatpush3.bf16.msra.mxu1 %v1232_v27  ;;  %1045 = vmatprep.subr.bf16.mxu0 %v1233_v28  ;;  %v471_v48 = vld [vmem:[%s1751_s24] sm:$0xff] }
 0x19a   : > { %1067 = vmatprep.subr.bf16.mxu1 %v1234_v29  ;;  %v990_v50 = vcombine.low %v471_v48, %v471_v48  ;;  %v991_v51 = vcombine.high %v471_v48, %v471_v48  ;;  %v470_v62 = vld [vmem:[#allocation2] sm:$0xff] }
 0x19c   : > { %1046 = vmatpush3.bf16.msra.mxu0 %v1235_v30  ;;  %775 = vmatprep.mubr.bf16.mxu0 %v991_v51 }
 0x19d   : > { %1068 = vmatpush3.bf16.msra.mxu1 %v1236_v31  ;;  %1047 = vmatprep.subr.bf16.mxu0 %v1237_v32 }
 0x19e   : > { %1069 = vmatprep.subr.bf16.mxu1 %v1238_v33  ;;  %p1026_p12 = scmp.ne.s32.totalorder %s1902_s29, 1 }
 0x1a0   : > { %1048 = vmatpush3.bf16.msra.mxu0 %v1239_v34 }
 0x1a1   : > { %1070 = vmatpush3.bf16.msra.mxu1 %v1240_v35  ;;  %1049 = vmatprep.subr.bf16.mxu0 %v1241_v36 }
 0x1a2   : > { %1071 = vmatprep.subr.bf16.mxu1 %v1242_v37 }
 0x1a4   : > { %1050 = vmatpush3.bf16.msra.mxu0 %v1243_v38 }
 0x1a5   : > { %1072 = vmatpush3.bf16.msra.mxu1 %v1244_v39  ;;  %1051 = vmatprep.subr.bf16.mxu0 %v1245_v40 }
 0x1a6   : > { %1073 = vmatprep.subr.bf16.mxu1 %v1246_v41 }
 0x1a8   : > { %1052 = vmatpush3.bf16.msra.mxu0 %v1247_v42 }
 0x1a9   : > { %1074 = vmatpush3.bf16.msra.mxu1 %v1248_v43  ;;  %1053 = vmatprep.subr.bf16.mxu0 %v1249_v44 }
 0x1aa   : > { %1075 = vmatprep.subr.bf16.mxu1 %v1250_v45 }
 0x1ac   : > { %1054 = vmatpush3.bf16.msra.mxu0 %v1251_v46 }
 0x1ad   : > { %1076 = vmatpush3.bf16.msra.mxu1 %v1252_v47 }
 0x1af   : > { %776 = vmatmul.mubr.bf16.vlgmr.msra.gmra.mrb[0].mxu0 %v990_v50 }
 0x1b0   : > { %816 = vmatmul.mubr.bf16.vlgmr.msra.gmra.mrb[0].mxu1 %v992_v52 }
 0x282   : > { %v1055_v54 = vpop.f32.mrb[0].mxu0 }
 0x283   : > { %v1077_v55 = vpop.f32.mrb[0].mxu1  ;;  %v1056_v56 = vpop.f32.mrb[1].mxu0 }
 0x284   : > { %v1078_v57 = vpop.f32.mrb[1].mxu1  ;;  %v1057_v58 = vadd.f32 %v1056_v56, %v1055_v54  ;;  %v1058_v60 = vpop.f32.mrb[2].mxu0 }
 0x285   : > { %v1079_v59 = vadd.f32 %v1078_v57, %v1077_v55  ;;  %v1080_v61 = vpop.f32.mrb[2].mxu1  ;;  %v1059_v63 = vpop.f32.mrb[3].mxu0  ;;  %828 = sbr.rel (%p1026_p12) target bundleno = 664 (0x298), region = 60 }
 0x286   : > { %v1081_v0 = vpop.f32.mrb[3].mxu1 }
 0x287   : > { %v818_v1 = vadd.f32 %v1079_v59, %v1057_v58 }
 0x289   : > { %v823_v2 = vadd.f32 %v818_v1, %v470_v62 }
 0x28b   : > { %824 = vst [vmem:[#allocation2] sm:$0xff] %v823_v2 }
 0x292   : > { %v829_v3 = vld [vmem:[#allocation2] sm:$0xff] }
 0x293   : > { %v830_v4 = vmax.f32 %v829_v3, 0.0 }
 0x295   : > { %v831_v5 = vpack.c.bf16 %v830_v4, %v830_v4 }
 0x297   : > { %832 = vst [vmem:[%s1756_s17] sm:$0xf] %v831_v5 }
 0x298 PF: > { %s21_s28 = sadd.s32 1, %s1441_s28   ;;  %s1903_s24 = sld [smem:[#allocation12_spill]] }
 0x299   : > { %p18_p2 = scmp.ge.s32.totalorder %s21_s28, 6   ;;  %s1904_s14 = sld [smem:[#allocation14_spill]] }
 0x29a   : > { %s1905_s18 = smov %s1405_s19  ;;  %s1906_s19 = smov %s1409_s20 }
 0x29b   : > { %s1907_s20 = smov %s1647_s21  ;;  %s1908_s21 = smov %s1417_s22 }
 0x29c   : > { %s1909_s22 = smov %s1421_s23  ;;  %s1910_s23 = smov %s1650_s26 }
 0x29d   : > { %s1911_s25 = smov %s1437_s27  ;;  %s1913_s27 = smov %s1919_s12 }
 0x29e   :  { %20 = sbr.rel (!%p18_p2) target bundleno = 14 (0xe), region = 115 }
 0x29f   : > { %s1912_s26 = smov %s1904_s14 }
 0x2a5   :  { %852 = vsyncpa [#allocation4], 1 }
 0x2a6   :  { %854 = vsyncpa [#allocation4 + $0x1], 1 }
 0x2a7   :  { %855 = vsyncpa [#allocation6], 1 }
 0x2a8   :  { %857 = vsyncpa [#allocation6 + $0x1], 1 }

</bundles_post_ra>
